<compile_context>
chip_gen: v7x
topology: tpu7x:2x2x1
jax: 0.10.0
libtpu: 0.0.40
codegen_flags: <defaults>
</compile_context>

<pallas_src>
import functools

import jax
import jax.numpy as jnp
from jax import lax
from jax.experimental import pallas as pl
from jax.experimental.pallas import tpu as pltpu


def classifier_kernel(gi_ref, len_ref,
                      whh_f_ref, whh_b_ref, bhn_f_ref, bhn_b_ref,
                      fc1wf_ref, fc1wb_ref, fc1b_ref,
                      fc2w_ref, fc2b_ref, fc3w_ref, fc3b_ref,
                      out_ref, *, seq_len, hidden_dim):
    """Serial part only: fused bidirectional GRU recurrence + MLP head.

    gi_ref: (6, T, bb, H) f32 gate pre-activations (x@W_ih + fused biases),
            layout [fwd r, fwd z, fwd n, bwd r, bwd z, bwd n] on the lead dim.
    """
    T, H = seq_len, hidden_dim
    bb = len_ref.shape[0]
    lengths = len_ref[...]                                   # (bb, 1) int32

    whh_f = whh_f_ref[...]                                   # (H, 3H)
    whh_b = whh_b_ref[...]
    w_dt = whh_f.dtype
    # Per-gate recurrent weights, sliced ONCE (loop-invariant, off the serial
    # path) so there is no sub-vreg gate slicing inside the recurrence.
    wf_r, wf_z, wf_n = whh_f[:, :H], whh_f[:, H:2 * H], whh_f[:, 2 * H:]
    wb_r, wb_z, wb_n = whh_b[:, :H], whh_b[:, H:2 * H], whh_b[:, 2 * H:]
    bhn_f = bhn_f_ref[...]                                   # (1, H) f32
    bhn_b = bhn_b_ref[...]

    h0 = jnp.zeros((bb, H), jnp.float32)

    def step(s, carry):
        h_f, h_b = carry
        tb = T - 1 - s                                       # reversed time index
        hf = h_f.astype(w_dt)
        hb = h_b.astype(w_dt)
        # The only matmuls on the serial path: issue all six back-to-back so
        # they pipeline in the MXU before any VPU/EUP gate math.
        hr_f = jnp.dot(hf, wf_r, preferred_element_type=jnp.float32)
        hz_f = jnp.dot(hf, wf_z, preferred_element_type=jnp.float32)
        hn_f = jnp.dot(hf, wf_n, preferred_element_type=jnp.float32)
        hr_b = jnp.dot(hb, wb_r, preferred_element_type=jnp.float32)
        hz_b = jnp.dot(hb, wb_z, preferred_element_type=jnp.float32)
        hn_b = jnp.dot(hb, wb_n, preferred_element_type=jnp.float32)
        # Gate math in f32 (VPU/EUP).  gi already contains x@W_ih + b_i (+ b_h
        # for the r/z gates); only the n-gate recurrent bias is added here so
        # that r * (W_hn h + b_hn) matches the PyTorch GRU exactly.
        r_f = jax.nn.sigmoid(gi_ref[0, s] + hr_f)
        z_f = jax.nn.sigmoid(gi_ref[1, s] + hz_f)
        n_f = jnp.tanh(gi_ref[2, s] + r_f * (hn_f + bhn_f))
        r_b = jax.nn.sigmoid(gi_ref[3, tb] + hr_b)
        z_b = jax.nn.sigmoid(gi_ref[4, tb] + hz_b)
        n_b = jnp.tanh(gi_ref[5, tb] + r_b * (hn_b + bhn_b))
        h_f_new = n_f + z_f * (h_f - n_f)                    # (1-z)*n + z*h
        h_b_new = n_b + z_b * (h_b - n_b)
        # pack_padded_sequence masking (padded steps leave h unchanged).
        h_f = jnp.where(lengths > s, h_f_new, h_f)
        h_b = jnp.where(lengths > tb, h_b_new, h_b)
        return (h_f, h_b)

    # Fused fwd+bwd recurrence, fully unrolled (T is a static constant).
    h_f, h_b = lax.fori_loop(0, T, step, (h0, h0), unroll=True)

    # MLP head.  Split fc1 matmul == cat(h_fwd, h_bwd) @ fc1_w without the
    # lane concat; the two partial matmuls co-issue.
    x = (jnp.dot(h_f.astype(w_dt), fc1wf_ref[...],
                 preferred_element_type=jnp.float32)
         + jnp.dot(h_b.astype(w_dt), fc1wb_ref[...],
                   preferred_element_type=jnp.float32)
         + fc1b_ref[...])
    x = jnp.maximum(x, 0.0)                                  # ReLU
    x = jnp.dot(x.astype(w_dt), fc2w_ref[...],
                preferred_element_type=jnp.float32) + fc2b_ref[...]
    x = jnp.maximum(x, 0.0)                                  # ReLU
    x = jnp.dot(x.astype(w_dt), fc3w_ref[...],
                preferred_element_type=jnp.float32) + fc3b_ref[...]
    out_ref[...] = jax.nn.sigmoid(x)                         # (bb, O)


def classifier_forward(text, text_lengths, params, *,
                       mxu_dtype=jnp.float32, batch_block=None):
    """text: (B, T) int32 token ids (sorted by length descending),
    text_lengths: (B,) int32.  Returns (B, output_dim) float32.

    mxu_dtype: dtype of matmul operands (weights / embeddings).  Use
    jnp.bfloat16 on v6e/v7x; accumulation and gate math stay f32 everywhere.
    """
    emb_table = params["embedding"]
    B, T = text.shape
    E = emb_table.shape[1]
    H = params["whh_f"].shape[0]
    O = params["fc3_w"].shape[1]
    if batch_block is None:
        batch_block = B if B <= 8 else 8
    assert B % batch_block == 0
    assert batch_block % 8 == 0 or batch_block == B

    # Gather embeddings directly in time-major order: only the small (B, T)
    # id matrix is transposed, not the embedded tensor (no extra HBM pass).
    emb_tm = jnp.take(emb_table, text.T, axis=0).astype(mxu_dtype)     # (T,B,E)

    # --- hoisted input projection (one big matmul, off the serial path) ---
    w_ih_all = jnp.concatenate(
        [params["wih_f"], params["wih_b"]], axis=1).astype(mxu_dtype)  # (E,6H)
    # Fuse b_ih and (for r/z gates) b_hh into the pre-activation bias.
    b_gi = jnp.concatenate([
        params["bih_f"][:, :2 * H] + params["bhh_f"][:, :2 * H],
        params["bih_f"][:, 2 * H:],
        params["bih_b"][:, :2 * H] + params["bhh_b"][:, :2 * H],
        params["bih_b"][:, 2 * H:],
    ], axis=1).astype(jnp.float32)                                     # (1,6H)
    gi = jnp.dot(emb_tm.reshape(T * B, E), w_ih_all,
                 preferred_element_type=jnp.float32) + b_gi            # (T*B,6H)
    # Per-(direction, gate) leading-dim layout -> no lane slicing in-kernel.
    gi = gi.reshape(T, B, 6, H).transpose(2, 0, 1, 3)                  # (6,T,B,H)

    lengths = text_lengths.astype(jnp.int32).reshape(B, 1)
    whh_f = params["whh_f"].astype(mxu_dtype)
    whh_b = params["whh_b"].astype(mxu_dtype)
    bhn_f = params["bhh_f"][:, 2 * H:].astype(jnp.float32)             # (1,H)
    bhn_b = params["bhh_b"][:, 2 * H:].astype(jnp.float32)
    fc1w_f = params["fc1_w"][:H].astype(mxu_dtype)                     # (H,64)
    fc1w_b = params["fc1_w"][H:].astype(mxu_dtype)                     # (H,64)
    fc1b = params["fc1_b"]
    fc2w = params["fc2_w"].astype(mxu_dtype)
    fc2b = params["fc2_b"]
    fc3w = params["fc3_w"].astype(mxu_dtype)
    fc3b = params["fc3_b"]

    kernel = functools.partial(classifier_kernel, seq_len=T, hidden_dim=H)
    n_blocks = B // batch_block

    def full(a):
        return pl.BlockSpec(a.shape, lambda i, _nd=a.ndim: (0,) * _nd)

    in_specs = [
        pl.BlockSpec((6, T, batch_block, H), lambda i: (0, 0, i, 0)),   # gi
        pl.BlockSpec((batch_block, 1), lambda i: (i, 0)),               # lengths
        full(whh_f), full(whh_b), full(bhn_f), full(bhn_b),
        full(fc1w_f), full(fc1w_b), full(fc1b),
        full(fc2w), full(fc2b), full(fc3w), full(fc3b),
    ]
    out_spec = pl.BlockSpec((batch_block, O), lambda i: (i, 0))

    return pl.pallas_call(
        kernel,
        out_shape=jax.ShapeDtypeStruct((B, O), jnp.float32),
        grid=(n_blocks,),
        in_specs=in_specs,
        out_specs=out_spec,
        compiler_params=pltpu.CompilerParams(
            dimension_semantics=("parallel",),          # megacore over batch (v7x)
            vmem_limit_bytes=32 * 1024 * 1024),
    )(gi, lengths, whh_f, whh_b, bhn_f, bhn_b,
      fc1w_f, fc1w_b, fc1b, fc2w, fc2b, fc3w, fc3b)


def reference_forward(text, text_lengths, params):
    """Pure-JAX reference (same math as the PyTorch module, inference mode)."""
    emb = params["embedding"][text].astype(jnp.float32)      # (B, T, E)
    B, T, _ = emb.shape
    H = params["whh_f"].shape[0]
    lengths = text_lengths.reshape(B, 1)

    def cell(x_t, h, wih, bih, whh, bhh):
        gi = x_t @ wih + bih
        gh = h @ whh + bhh
        r = jax.nn.sigmoid(gi[:, :H] + gh[:, :H])
        z = jax.nn.sigmoid(gi[:, H:2 * H] + gh[:, H:2 * H])
        n = jnp.tanh(gi[:, 2 * H:] + r * gh[:, 2 * H:])
        return (1.0 - z) * n + z * h

    h = jnp.zeros((B, H), jnp.float32)
    for t in range(T):
        hn = cell(emb[:, t], h, params["wih_f"], params["bih_f"],
                  params["whh_f"], params["bhh_f"])
        h = jnp.where(lengths > t, hn, h)
    h_fwd = h
    h = jnp.zeros((B, H), jnp.float32)
    for t in range(T - 1, -1, -1):
        hn = cell(emb[:, t], h, params["wih_b"], params["bih_b"],
                  params["whh_b"], params["bhh_b"])
        h = jnp.where(lengths > t, hn, h)
    h_bwd = h
    hidden = jnp.concatenate([h_fwd, h_bwd], axis=1)
    x = jnp.maximum(hidden @ params["fc1_w"] + params["fc1_b"], 0.0)
    x = jnp.maximum(x @ params["fc2_w"] + params["fc2_b"], 0.0)
    return jax.nn.sigmoid(x @ params["fc3_w"] + params["fc3_b"])


def init_params(key, vocab_size, embedding_dim, hidden_dim, output_dim):
    ks = jax.random.split(key, 16)
    s = 0.1

    def w(k, shape):
        return (s * jax.random.normal(k, shape)).astype(jnp.float32)

    E, H, O = embedding_dim, hidden_dim, output_dim
    return {
        "embedding": w(ks[0], (vocab_size, E)),
        # GRU forward direction (weights stored transposed: in x out; gate
        # order [r, z, n] as in PyTorch's stacked weight_ih/weight_hh).
        "wih_f": w(ks[1], (E, 3 * H)), "whh_f": w(ks[2], (H, 3 * H)),
        "bih_f": w(ks[3], (1, 3 * H)), "bhh_f": w(ks[4], (1, 3 * H)),
        # GRU backward direction
        "wih_b": w(ks[5], (E, 3 * H)), "whh_b": w(ks[6], (H, 3 * H)),
        "bih_b": w(ks[7], (1, 3 * H)), "bhh_b": w(ks[8], (1, 3 * H)),
        # MLP head
        "fc1_w": w(ks[9], (2 * H, 64)), "fc1_b": w(ks[10], (1, 64)),
        "fc2_w": w(ks[11], (64, 16)),   "fc2_b": w(ks[12], (1, 16)),
        "fc3_w": w(ks[13], (16, O)),    "fc3_b": w(ks[14], (1, O)),
    }


if __name__ == "__main__":
    # Small, module-consistent shapes.
    vocab_size, embedding_dim, hidden_dim, output_dim = 100, 32, 32, 1
    B, T = 8, 8

    key = jax.random.PRNGKey(0)
    k_par, k_txt = jax.random.split(key)
    params = init_params(k_par, vocab_size, embedding_dim, hidden_dim, output_dim)

    text = jax.random.randint(k_txt, (B, T), 0, vocab_size, dtype=jnp.int32)
    # pack_padded_sequence(enforce_sorted=True) needs descending lengths.
    text_lengths = jnp.array([8, 8, 7, 6, 5, 4, 3, 2], dtype=jnp.int32)

    fwd_f32 = jax.jit(lambda t, l, p: classifier_forward(t, l, p,
                                                         mxu_dtype=jnp.float32))
    fwd_bf16 = jax.jit(lambda t, l, p: classifier_forward(t, l, p,
                                                          mxu_dtype=jnp.bfloat16))

    out = jax.block_until_ready(fwd_f32(text, text_lengths, params))
    ref = reference_forward(text, text_lengths, params)
    assert out.shape == (B, output_dim)
    assert jnp.allclose(out, ref, rtol=1e-5, atol=1e-5), (out, ref)

    # bf16 MXU-operand variant (v6e/v7x); loose tolerance vs the f32 reference.
    out_bf16 = jax.block_until_ready(fwd_bf16(text, text_lengths, params))
    assert out_bf16.shape == (B, output_dim)
    assert jnp.allclose(out_bf16, ref, atol=1e-1), (out_bf16, ref)

    print("KERNEL_OK")
</pallas_src>

<mosaic_0001>
module attributes {stable_mosaic.version = 11 : i64} {
  func.func @classifier_kernel(%arg0: i32, %arg1: memref<6x8x8x32xf32, #tpu.memory_space<vmem>>, %arg2: memref<8x1xi32, #tpu.memory_space<vmem>>, %arg3: memref<32x96xf32, #tpu.memory_space<vmem>>, %arg4: memref<32x96xf32, #tpu.memory_space<vmem>>, %arg5: memref<1x32xf32, #tpu.memory_space<vmem>>, %arg6: memref<1x32xf32, #tpu.memory_space<vmem>>, %arg7: memref<32x64xf32, #tpu.memory_space<vmem>>, %arg8: memref<32x64xf32, #tpu.memory_space<vmem>>, %arg9: memref<1x64xf32, #tpu.memory_space<vmem>>, %arg10: memref<64x16xf32, #tpu.memory_space<vmem>>, %arg11: memref<1x16xf32, #tpu.memory_space<vmem>>, %arg12: memref<16x1xf32, #tpu.memory_space<vmem>>, %arg13: memref<1x1xf32, #tpu.memory_space<vmem>>, %arg14: memref<8x1xf32, #tpu.memory_space<vmem>>) attributes {dimension_semantics = [#tpu.dimension_semantics<parallel>], iteration_bounds = array<i64: 1>, scalar_prefetch = 0 : i64, scratch_operands = 0 : i64, tpu.core_type = #tpu.core_type<tc>, window_params = [{transform_indices = @transform_0, window_bounds = array<i64: 6, 8, 8, 32>}, {transform_indices = @transform_1, window_bounds = array<i64: 8, 1>}, {pipeline_mode = #tpu.pipeline_mode<synchronous>, transform_indices = @transform_2, window_bounds = array<i64: 32, 96>}, {pipeline_mode = #tpu.pipeline_mode<synchronous>, transform_indices = @transform_3, window_bounds = array<i64: 32, 96>}, {pipeline_mode = #tpu.pipeline_mode<synchronous>, transform_indices = @transform_4, window_bounds = array<i64: 1, 32>}, {pipeline_mode = #tpu.pipeline_mode<synchronous>, transform_indices = @transform_5, window_bounds = array<i64: 1, 32>}, {pipeline_mode = #tpu.pipeline_mode<synchronous>, transform_indices = @transform_6, window_bounds = array<i64: 32, 64>}, {pipeline_mode = #tpu.pipeline_mode<synchronous>, transform_indices = @transform_7, window_bounds = array<i64: 32, 64>}, {pipeline_mode = #tpu.pipeline_mode<synchronous>, transform_indices = @transform_8, window_bounds = array<i64: 1, 64>}, {pipeline_mode = #tpu.pipeline_mode<synchronous>, transform_indices = @transform_9, window_bounds = array<i64: 64, 16>}, {pipeline_mode = #tpu.pipeline_mode<synchronous>, transform_indices = @transform_10, window_bounds = array<i64: 1, 16>}, {pipeline_mode = #tpu.pipeline_mode<synchronous>, transform_indices = @transform_11, window_bounds = array<i64: 16, 1>}, {pipeline_mode = #tpu.pipeline_mode<synchronous>, transform_indices = @transform_12, window_bounds = array<i64: 1, 1>}, {transform_indices = @transform_13, window_bounds = array<i64: 8, 1>}]} {
    %c0 = arith.constant 0 : index
    %c0_0 = arith.constant 0 : index
    %0 = vector.load %arg2[%c0, %c0_0] : memref<8x1xi32, #tpu.memory_space<vmem>>, vector<8x1xi32>
    %c0_1 = arith.constant 0 : index
    %c0_2 = arith.constant 0 : index
    %1 = vector.load %arg3[%c0_1, %c0_2] : memref<32x96xf32, #tpu.memory_space<vmem>>, vector<32x96xf32>
    %c0_3 = arith.constant 0 : index
    %c0_4 = arith.constant 0 : index
    %2 = vector.load %arg4[%c0_3, %c0_4] : memref<32x96xf32, #tpu.memory_space<vmem>>, vector<32x96xf32>
    %3 = vector.extract_strided_slice %1 {offsets = [0, 0], sizes = [32, 32], strides = [1, 1]} : vector<32x96xf32> to vector<32x32xf32>
    %4 = vector.extract_strided_slice %1 {offsets = [0, 32], sizes = [32, 32], strides = [1, 1]} : vector<32x96xf32> to vector<32x32xf32>
    %5 = vector.extract_strided_slice %1 {offsets = [0, 64], sizes = [32, 32], strides = [1, 1]} : vector<32x96xf32> to vector<32x32xf32>
    %6 = vector.extract_strided_slice %2 {offsets = [0, 0], sizes = [32, 32], strides = [1, 1]} : vector<32x96xf32> to vector<32x32xf32>
    %7 = vector.extract_strided_slice %2 {offsets = [0, 32], sizes = [32, 32], strides = [1, 1]} : vector<32x96xf32> to vector<32x32xf32>
    %8 = vector.extract_strided_slice %2 {offsets = [0, 64], sizes = [32, 32], strides = [1, 1]} : vector<32x96xf32> to vector<32x32xf32>
    %c0_5 = arith.constant 0 : index
    %c0_6 = arith.constant 0 : index
    %9 = vector.load %arg5[%c0_5, %c0_6] : memref<1x32xf32, #tpu.memory_space<vmem>>, vector<1x32xf32>
    %c0_7 = arith.constant 0 : index
    %c0_8 = arith.constant 0 : index
    %10 = vector.load %arg6[%c0_7, %c0_8] : memref<1x32xf32, #tpu.memory_space<vmem>>, vector<1x32xf32>
    %cst = arith.constant 0.000000e+00 : f32
    %11 = vector.broadcast %cst : f32 to vector<8x32xf32>
    %c0_i32 = arith.constant 0 : i32
    %c7_i32 = arith.constant 7 : i32
    %12 = arith.subi %c7_i32, %c0_i32 : i32
    %cst_9 = arith.constant dense<0.000000e+00> : vector<8x32xf32>
    %13 = tpu.matmul %11, %3, %cst_9 {dimension_numbers = #tpu.dot_dimension_numbers<[1], [0], [0], [1], [0, 0, 1, 1], [], []>} : vector<8x32xf32>, vector<32x32xf32>, vector<8x32xf32> -> vector<8x32xf32>
    %cst_10 = arith.constant dense<0.000000e+00> : vector<8x32xf32>
    %14 = tpu.matmul %11, %4, %cst_10 {dimension_numbers = #tpu.dot_dimension_numbers<[1], [0], [0], [1], [0, 0, 1, 1], [], []>} : vector<8x32xf32>, vector<32x32xf32>, vector<8x32xf32> -> vector<8x32xf32>
    %cst_11 = arith.constant dense<0.000000e+00> : vector<8x32xf32>
    %15 = tpu.matmul %11, %5, %cst_11 {dimension_numbers = #tpu.dot_dimension_numbers<[1], [0], [0], [1], [0, 0, 1, 1], [], []>} : vector<8x32xf32>, vector<32x32xf32>, vector<8x32xf32> -> vector<8x32xf32>
    %cst_12 = arith.constant dense<0.000000e+00> : vector<8x32xf32>
    %16 = tpu.matmul %11, %6, %cst_12 {dimension_numbers = #tpu.dot_dimension_numbers<[1], [0], [0], [1], [0, 0, 1, 1], [], []>} : vector<8x32xf32>, vector<32x32xf32>, vector<8x32xf32> -> vector<8x32xf32>
    %cst_13 = arith.constant dense<0.000000e+00> : vector<8x32xf32>
    %17 = tpu.matmul %11, %7, %cst_13 {dimension_numbers = #tpu.dot_dimension_numbers<[1], [0], [0], [1], [0, 0, 1, 1], [], []>} : vector<8x32xf32>, vector<32x32xf32>, vector<8x32xf32> -> vector<8x32xf32>
    %cst_14 = arith.constant dense<0.000000e+00> : vector<8x32xf32>
    %18 = tpu.matmul %11, %8, %cst_14 {dimension_numbers = #tpu.dot_dimension_numbers<[1], [0], [0], [1], [0, 0, 1, 1], [], []>} : vector<8x32xf32>, vector<32x32xf32>, vector<8x32xf32> -> vector<8x32xf32>
    %c0_15 = arith.constant 0 : index
    %19 = arith.index_cast %c0_i32 : i32 to index
    %c0_16 = arith.constant 0 : index
    %c0_17 = arith.constant 0 : index
    %20 = vector.load %arg1[%c0_15, %19, %c0_16, %c0_17] : memref<6x8x8x32xf32, #tpu.memory_space<vmem>>, vector<1x1x8x32xf32>
    %21 = vector.shape_cast %20 : vector<1x1x8x32xf32> to vector<8x32xf32>
    %22 = arith.addf %21, %13 : vector<8x32xf32>
    %23 = arith.negf %22 : vector<8x32xf32>
    %24 = math.exp %23 : vector<8x32xf32>
    %cst_18 = arith.constant 1.000000e+00 : f32
    %25 = vector.broadcast %cst_18 : f32 to vector<8x32xf32>
    %26 = arith.addf %25, %24 : vector<8x32xf32>
    %27 = arith.divf %25, %26 : vector<8x32xf32>
    %c1 = arith.constant 1 : index
    %28 = arith.index_cast %c0_i32 : i32 to index
    %c0_19 = arith.constant 0 : index
    %c0_20 = arith.constant 0 : index
    %29 = vector.load %arg1[%c1, %28, %c0_19, %c0_20] : memref<6x8x8x32xf32, #tpu.memory_space<vmem>>, vector<1x1x8x32xf32>
    %30 = vector.shape_cast %29 : vector<1x1x8x32xf32> to vector<8x32xf32>
    %31 = arith.addf %30, %14 : vector<8x32xf32>
    %32 = arith.negf %31 : vector<8x32xf32>
    %33 = math.exp %32 : vector<8x32xf32>
    %cst_21 = arith.constant 1.000000e+00 : f32
    %34 = vector.broadcast %cst_21 : f32 to vector<8x32xf32>
    %35 = arith.addf %34, %33 : vector<8x32xf32>
    %36 = arith.divf %34, %35 : vector<8x32xf32>
    %c2 = arith.constant 2 : index
    %37 = arith.index_cast %c0_i32 : i32 to index
    %c0_22 = arith.constant 0 : index
    %c0_23 = arith.constant 0 : index
    %38 = vector.load %arg1[%c2, %37, %c0_22, %c0_23] : memref<6x8x8x32xf32, #tpu.memory_space<vmem>>, vector<1x1x8x32xf32>
    %39 = vector.shape_cast %38 : vector<1x1x8x32xf32> to vector<8x32xf32>
    %40 = vector.broadcast %9 : vector<1x32xf32> to vector<8x32xf32>
    %41 = arith.addf %15, %40 : vector<8x32xf32>
    %42 = arith.mulf %27, %41 : vector<8x32xf32>
    %43 = arith.addf %39, %42 : vector<8x32xf32>
    %44 = math.tanh %43 : vector<8x32xf32>
    %c3 = arith.constant 3 : index
    %45 = arith.index_cast %12 : i32 to index
    %c0_24 = arith.constant 0 : index
    %c0_25 = arith.constant 0 : index
    %46 = vector.load %arg1[%c3, %45, %c0_24, %c0_25] : memref<6x8x8x32xf32, #tpu.memory_space<vmem>>, vector<1x1x8x32xf32>
    %47 = vector.shape_cast %46 : vector<1x1x8x32xf32> to vector<8x32xf32>
    %48 = arith.addf %47, %16 : vector<8x32xf32>
    %49 = arith.negf %48 : vector<8x32xf32>
    %50 = math.exp %49 : vector<8x32xf32>
    %cst_26 = arith.constant 1.000000e+00 : f32
    %51 = vector.broadcast %cst_26 : f32 to vector<8x32xf32>
    %52 = arith.addf %51, %50 : vector<8x32xf32>
    %53 = arith.divf %51, %52 : vector<8x32xf32>
    %c4 = arith.constant 4 : index
    %54 = arith.index_cast %12 : i32 to index
    %c0_27 = arith.constant 0 : index
    %c0_28 = arith.constant 0 : index
    %55 = vector.load %arg1[%c4, %54, %c0_27, %c0_28] : memref<6x8x8x32xf32, #tpu.memory_space<vmem>>, vector<1x1x8x32xf32>
    %56 = vector.shape_cast %55 : vector<1x1x8x32xf32> to vector<8x32xf32>
    %57 = arith.addf %56, %17 : vector<8x32xf32>
    %58 = arith.negf %57 : vector<8x32xf32>
    %59 = math.exp %58 : vector<8x32xf32>
    %cst_29 = arith.constant 1.000000e+00 : f32
    %60 = vector.broadcast %cst_29 : f32 to vector<8x32xf32>
    %61 = arith.addf %60, %59 : vector<8x32xf32>
    %62 = arith.divf %60, %61 : vector<8x32xf32>
    %c5 = arith.constant 5 : index
    %63 = arith.index_cast %12 : i32 to index
    %c0_30 = arith.constant 0 : index
    %c0_31 = arith.constant 0 : index
    %64 = vector.load %arg1[%c5, %63, %c0_30, %c0_31] : memref<6x8x8x32xf32, #tpu.memory_space<vmem>>, vector<1x1x8x32xf32>
    %65 = vector.shape_cast %64 : vector<1x1x8x32xf32> to vector<8x32xf32>
    %66 = vector.broadcast %10 : vector<1x32xf32> to vector<8x32xf32>
    %67 = arith.addf %18, %66 : vector<8x32xf32>
    %68 = arith.mulf %53, %67 : vector<8x32xf32>
    %69 = arith.addf %65, %68 : vector<8x32xf32>
    %70 = math.tanh %69 : vector<8x32xf32>
    %71 = arith.subf %11, %44 : vector<8x32xf32>
    %72 = arith.mulf %36, %71 : vector<8x32xf32>
    %73 = arith.addf %44, %72 : vector<8x32xf32>
    %74 = arith.subf %11, %70 : vector<8x32xf32>
    %75 = arith.mulf %62, %74 : vector<8x32xf32>
    %76 = arith.addf %70, %75 : vector<8x32xf32>
    %77 = vector.broadcast %c0_i32 : i32 to vector<8x1xi32>
    %78 = arith.cmpi sgt, %0, %77 : vector<8x1xi32>
    %79 = vector.shape_cast %78 : vector<8x1xi1> to vector<8x1xi1>
    %80 = vector.broadcast %79 : vector<8x1xi1> to vector<8x32xi1>
    %81 = arith.select %80, %73, %11 : vector<8x32xi1>, vector<8x32xf32>
    %82 = vector.broadcast %12 : i32 to vector<8x1xi32>
    %83 = arith.cmpi sgt, %0, %82 : vector<8x1xi32>
    %84 = vector.shape_cast %83 : vector<8x1xi1> to vector<8x1xi1>
    %85 = vector.broadcast %84 : vector<8x1xi1> to vector<8x32xi1>
    %86 = arith.select %85, %76, %11 : vector<8x32xi1>, vector<8x32xf32>
    %c1_i32 = arith.constant 1 : i32
    %c7_i32_32 = arith.constant 7 : i32
    %87 = arith.subi %c7_i32_32, %c1_i32 : i32
    %cst_33 = arith.constant dense<0.000000e+00> : vector<8x32xf32>
    %88 = tpu.matmul %81, %3, %cst_33 {dimension_numbers = #tpu.dot_dimension_numbers<[1], [0], [0], [1], [0, 0, 1, 1], [], []>} : vector<8x32xf32>, vector<32x32xf32>, vector<8x32xf32> -> vector<8x32xf32>
    %cst_34 = arith.constant dense<0.000000e+00> : vector<8x32xf32>
    %89 = tpu.matmul %81, %4, %cst_34 {dimension_numbers = #tpu.dot_dimension_numbers<[1], [0], [0], [1], [0, 0, 1, 1], [], []>} : vector<8x32xf32>, vector<32x32xf32>, vector<8x32xf32> -> vector<8x32xf32>
    %cst_35 = arith.constant dense<0.000000e+00> : vector<8x32xf32>
    %90 = tpu.matmul %81, %5, %cst_35 {dimension_numbers = #tpu.dot_dimension_numbers<[1], [0], [0], [1], [0, 0, 1, 1], [], []>} : vector<8x32xf32>, vector<32x32xf32>, vector<8x32xf32> -> vector<8x32xf32>
    %cst_36 = arith.constant dense<0.000000e+00> : vector<8x32xf32>
    %91 = tpu.matmul %86, %6, %cst_36 {dimension_numbers = #tpu.dot_dimension_numbers<[1], [0], [0], [1], [0, 0, 1, 1], [], []>} : vector<8x32xf32>, vector<32x32xf32>, vector<8x32xf32> -> vector<8x32xf32>
    %cst_37 = arith.constant dense<0.000000e+00> : vector<8x32xf32>
    %92 = tpu.matmul %86, %7, %cst_37 {dimension_numbers = #tpu.dot_dimension_numbers<[1], [0], [0], [1], [0, 0, 1, 1], [], []>} : vector<8x32xf32>, vector<32x32xf32>, vector<8x32xf32> -> vector<8x32xf32>
    %cst_38 = arith.constant dense<0.000000e+00> : vector<8x32xf32>
    %93 = tpu.matmul %86, %8, %cst_38 {dimension_numbers = #tpu.dot_dimension_numbers<[1], [0], [0], [1], [0, 0, 1, 1], [], []>} : vector<8x32xf32>, vector<32x32xf32>, vector<8x32xf32> -> vector<8x32xf32>
    %c0_39 = arith.constant 0 : index
    %94 = arith.index_cast %c1_i32 : i32 to index
    %c0_40 = arith.constant 0 : index
    %c0_41 = arith.constant 0 : index
    %95 = vector.load %arg1[%c0_39, %94, %c0_40, %c0_41] : memref<6x8x8x32xf32, #tpu.memory_space<vmem>>, vector<1x1x8x32xf32>
    %96 = vector.shape_cast %95 : vector<1x1x8x32xf32> to vector<8x32xf32>
    %97 = arith.addf %96, %88 : vector<8x32xf32>
    %98 = arith.negf %97 : vector<8x32xf32>
    %99 = math.exp %98 : vector<8x32xf32>
    %cst_42 = arith.constant 1.000000e+00 : f32
    %100 = vector.broadcast %cst_42 : f32 to vector<8x32xf32>
    %101 = arith.addf %100, %99 : vector<8x32xf32>
    %102 = arith.divf %100, %101 : vector<8x32xf32>
    %c1_43 = arith.constant 1 : index
    %103 = arith.index_cast %c1_i32 : i32 to index
    %c0_44 = arith.constant 0 : index
    %c0_45 = arith.constant 0 : index
    %104 = vector.load %arg1[%c1_43, %103, %c0_44, %c0_45] : memref<6x8x8x32xf32, #tpu.memory_space<vmem>>, vector<1x1x8x32xf32>
    %105 = vector.shape_cast %104 : vector<1x1x8x32xf32> to vector<8x32xf32>
    %106 = arith.addf %105, %89 : vector<8x32xf32>
    %107 = arith.negf %106 : vector<8x32xf32>
    %108 = math.exp %107 : vector<8x32xf32>
    %cst_46 = arith.constant 1.000000e+00 : f32
    %109 = vector.broadcast %cst_46 : f32 to vector<8x32xf32>
    %110 = arith.addf %109, %108 : vector<8x32xf32>
    %111 = arith.divf %109, %110 : vector<8x32xf32>
    %c2_47 = arith.constant 2 : index
    %112 = arith.index_cast %c1_i32 : i32 to index
    %c0_48 = arith.constant 0 : index
    %c0_49 = arith.constant 0 : index
    %113 = vector.load %arg1[%c2_47, %112, %c0_48, %c0_49] : memref<6x8x8x32xf32, #tpu.memory_space<vmem>>, vector<1x1x8x32xf32>
    %114 = vector.shape_cast %113 : vector<1x1x8x32xf32> to vector<8x32xf32>
    %115 = vector.broadcast %9 : vector<1x32xf32> to vector<8x32xf32>
    %116 = arith.addf %90, %115 : vector<8x32xf32>
    %117 = arith.mulf %102, %116 : vector<8x32xf32>
    %118 = arith.addf %114, %117 : vector<8x32xf32>
    %119 = math.tanh %118 : vector<8x32xf32>
    %c3_50 = arith.constant 3 : index
    %120 = arith.index_cast %87 : i32 to index
    %c0_51 = arith.constant 0 : index
    %c0_52 = arith.constant 0 : index
    %121 = vector.load %arg1[%c3_50, %120, %c0_51, %c0_52] : memref<6x8x8x32xf32, #tpu.memory_space<vmem>>, vector<1x1x8x32xf32>
    %122 = vector.shape_cast %121 : vector<1x1x8x32xf32> to vector<8x32xf32>
    %123 = arith.addf %122, %91 : vector<8x32xf32>
    %124 = arith.negf %123 : vector<8x32xf32>
    %125 = math.exp %124 : vector<8x32xf32>
    %cst_53 = arith.constant 1.000000e+00 : f32
    %126 = vector.broadcast %cst_53 : f32 to vector<8x32xf32>
    %127 = arith.addf %126, %125 : vector<8x32xf32>
    %128 = arith.divf %126, %127 : vector<8x32xf32>
    %c4_54 = arith.constant 4 : index
    %129 = arith.index_cast %87 : i32 to index
    %c0_55 = arith.constant 0 : index
    %c0_56 = arith.constant 0 : index
    %130 = vector.load %arg1[%c4_54, %129, %c0_55, %c0_56] : memref<6x8x8x32xf32, #tpu.memory_space<vmem>>, vector<1x1x8x32xf32>
    %131 = vector.shape_cast %130 : vector<1x1x8x32xf32> to vector<8x32xf32>
    %132 = arith.addf %131, %92 : vector<8x32xf32>
    %133 = arith.negf %132 : vector<8x32xf32>
    %134 = math.exp %133 : vector<8x32xf32>
    %cst_57 = arith.constant 1.000000e+00 : f32
    %135 = vector.broadcast %cst_57 : f32 to vector<8x32xf32>
    %136 = arith.addf %135, %134 : vector<8x32xf32>
    %137 = arith.divf %135, %136 : vector<8x32xf32>
    %c5_58 = arith.constant 5 : index
    %138 = arith.index_cast %87 : i32 to index
    %c0_59 = arith.constant 0 : index
    %c0_60 = arith.constant 0 : index
    %139 = vector.load %arg1[%c5_58, %138, %c0_59, %c0_60] : memref<6x8x8x32xf32, #tpu.memory_space<vmem>>, vector<1x1x8x32xf32>
    %140 = vector.shape_cast %139 : vector<1x1x8x32xf32> to vector<8x32xf32>
    %141 = vector.broadcast %10 : vector<1x32xf32> to vector<8x32xf32>
    %142 = arith.addf %93, %141 : vector<8x32xf32>
    %143 = arith.mulf %128, %142 : vector<8x32xf32>
    %144 = arith.addf %140, %143 : vector<8x32xf32>
    %145 = math.tanh %144 : vector<8x32xf32>
    %146 = arith.subf %81, %119 : vector<8x32xf32>
    %147 = arith.mulf %111, %146 : vector<8x32xf32>
    %148 = arith.addf %119, %147 : vector<8x32xf32>
    %149 = arith.subf %86, %145 : vector<8x32xf32>
    %150 = arith.mulf %137, %149 : vector<8x32xf32>
    %151 = arith.addf %145, %150 : vector<8x32xf32>
    %152 = vector.broadcast %c1_i32 : i32 to vector<8x1xi32>
    %153 = arith.cmpi sgt, %0, %152 : vector<8x1xi32>
    %154 = vector.shape_cast %153 : vector<8x1xi1> to vector<8x1xi1>
    %155 = vector.broadcast %154 : vector<8x1xi1> to vector<8x32xi1>
    %156 = arith.select %155, %148, %81 : vector<8x32xi1>, vector<8x32xf32>
    %157 = vector.broadcast %87 : i32 to vector<8x1xi32>
    %158 = arith.cmpi sgt, %0, %157 : vector<8x1xi32>
    %159 = vector.shape_cast %158 : vector<8x1xi1> to vector<8x1xi1>
    %160 = vector.broadcast %159 : vector<8x1xi1> to vector<8x32xi1>
    %161 = arith.select %160, %151, %86 : vector<8x32xi1>, vector<8x32xf32>
    %c2_i32 = arith.constant 2 : i32
    %c7_i32_61 = arith.constant 7 : i32
    %162 = arith.subi %c7_i32_61, %c2_i32 : i32
    %cst_62 = arith.constant dense<0.000000e+00> : vector<8x32xf32>
    %163 = tpu.matmul %156, %3, %cst_62 {dimension_numbers = #tpu.dot_dimension_numbers<[1], [0], [0], [1], [0, 0, 1, 1], [], []>} : vector<8x32xf32>, vector<32x32xf32>, vector<8x32xf32> -> vector<8x32xf32>
    %cst_63 = arith.constant dense<0.000000e+00> : vector<8x32xf32>
    %164 = tpu.matmul %156, %4, %cst_63 {dimension_numbers = #tpu.dot_dimension_numbers<[1], [0], [0], [1], [0, 0, 1, 1], [], []>} : vector<8x32xf32>, vector<32x32xf32>, vector<8x32xf32> -> vector<8x32xf32>
    %cst_64 = arith.constant dense<0.000000e+00> : vector<8x32xf32>
    %165 = tpu.matmul %156, %5, %cst_64 {dimension_numbers = #tpu.dot_dimension_numbers<[1], [0], [0], [1], [0, 0, 1, 1], [], []>} : vector<8x32xf32>, vector<32x32xf32>, vector<8x32xf32> -> vector<8x32xf32>
    %cst_65 = arith.constant dense<0.000000e+00> : vector<8x32xf32>
    %166 = tpu.matmul %161, %6, %cst_65 {dimension_numbers = #tpu.dot_dimension_numbers<[1], [0], [0], [1], [0, 0, 1, 1], [], []>} : vector<8x32xf32>, vector<32x32xf32>, vector<8x32xf32> -> vector<8x32xf32>
    %cst_66 = arith.constant dense<0.000000e+00> : vector<8x32xf32>
    %167 = tpu.matmul %161, %7, %cst_66 {dimension_numbers = #tpu.dot_dimension_numbers<[1], [0], [0], [1], [0, 0, 1, 1], [], []>} : vector<8x32xf32>, vector<32x32xf32>, vector<8x32xf32> -> vector<8x32xf32>
    %cst_67 = arith.constant dense<0.000000e+00> : vector<8x32xf32>
    %168 = tpu.matmul %161, %8, %cst_67 {dimension_numbers = #tpu.dot_dimension_numbers<[1], [0], [0], [1], [0, 0, 1, 1], [], []>} : vector<8x32xf32>, vector<32x32xf32>, vector<8x32xf32> -> vector<8x32xf32>
    %c0_68 = arith.constant 0 : index
    %169 = arith.index_cast %c2_i32 : i32 to index
    %c0_69 = arith.constant 0 : index
    %c0_70 = arith.constant 0 : index
    %170 = vector.load %arg1[%c0_68, %169, %c0_69, %c0_70] : memref<6x8x8x32xf32, #tpu.memory_space<vmem>>, vector<1x1x8x32xf32>
    %171 = vector.shape_cast %170 : vector<1x1x8x32xf32> to vector<8x32xf32>
    %172 = arith.addf %171, %163 : vector<8x32xf32>
    %173 = arith.negf %172 : vector<8x32xf32>
    %174 = math.exp %173 : vector<8x32xf32>
    %cst_71 = arith.constant 1.000000e+00 : f32
    %175 = vector.broadcast %cst_71 : f32 to vector<8x32xf32>
    %176 = arith.addf %175, %174 : vector<8x32xf32>
    %177 = arith.divf %175, %176 : vector<8x32xf32>
    %c1_72 = arith.constant 1 : index
    %178 = arith.index_cast %c2_i32 : i32 to index
    %c0_73 = arith.constant 0 : index
    %c0_74 = arith.constant 0 : index
    %179 = vector.load %arg1[%c1_72, %178, %c0_73, %c0_74] : memref<6x8x8x32xf32, #tpu.memory_space<vmem>>, vector<1x1x8x32xf32>
    %180 = vector.shape_cast %179 : vector<1x1x8x32xf32> to vector<8x32xf32>
    %181 = arith.addf %180, %164 : vector<8x32xf32>
    %182 = arith.negf %181 : vector<8x32xf32>
    %183 = math.exp %182 : vector<8x32xf32>
    %cst_75 = arith.constant 1.000000e+00 : f32
    %184 = vector.broadcast %cst_75 : f32 to vector<8x32xf32>
    %185 = arith.addf %184, %183 : vector<8x32xf32>
    %186 = arith.divf %184, %185 : vector<8x32xf32>
    %c2_76 = arith.constant 2 : index
    %187 = arith.index_cast %c2_i32 : i32 to index
    %c0_77 = arith.constant 0 : index
    %c0_78 = arith.constant 0 : index
    %188 = vector.load %arg1[%c2_76, %187, %c0_77, %c0_78] : memref<6x8x8x32xf32, #tpu.memory_space<vmem>>, vector<1x1x8x32xf32>
    %189 = vector.shape_cast %188 : vector<1x1x8x32xf32> to vector<8x32xf32>
    %190 = vector.broadcast %9 : vector<1x32xf32> to vector<8x32xf32>
    %191 = arith.addf %165, %190 : vector<8x32xf32>
    %192 = arith.mulf %177, %191 : vector<8x32xf32>
    %193 = arith.addf %189, %192 : vector<8x32xf32>
    %194 = math.tanh %193 : vector<8x32xf32>
    %c3_79 = arith.constant 3 : index
    %195 = arith.index_cast %162 : i32 to index
    %c0_80 = arith.constant 0 : index
    %c0_81 = arith.constant 0 : index
    %196 = vector.load %arg1[%c3_79, %195, %c0_80, %c0_81] : memref<6x8x8x32xf32, #tpu.memory_space<vmem>>, vector<1x1x8x32xf32>
    %197 = vector.shape_cast %196 : vector<1x1x8x32xf32> to vector<8x32xf32>
    %198 = arith.addf %197, %166 : vector<8x32xf32>
    %199 = arith.negf %198 : vector<8x32xf32>
    %200 = math.exp %199 : vector<8x32xf32>
    %cst_82 = arith.constant 1.000000e+00 : f32
    %201 = vector.broadcast %cst_82 : f32 to vector<8x32xf32>
    %202 = arith.addf %201, %200 : vector<8x32xf32>
    %203 = arith.divf %201, %202 : vector<8x32xf32>
    %c4_83 = arith.constant 4 : index
    %204 = arith.index_cast %162 : i32 to index
    %c0_84 = arith.constant 0 : index
    %c0_85 = arith.constant 0 : index
    %205 = vector.load %arg1[%c4_83, %204, %c0_84, %c0_85] : memref<6x8x8x32xf32, #tpu.memory_space<vmem>>, vector<1x1x8x32xf32>
    %206 = vector.shape_cast %205 : vector<1x1x8x32xf32> to vector<8x32xf32>
    %207 = arith.addf %206, %167 : vector<8x32xf32>
    %208 = arith.negf %207 : vector<8x32xf32>
    %209 = math.exp %208 : vector<8x32xf32>
    %cst_86 = arith.constant 1.000000e+00 : f32
    %210 = vector.broadcast %cst_86 : f32 to vector<8x32xf32>
    %211 = arith.addf %210, %209 : vector<8x32xf32>
    %212 = arith.divf %210, %211 : vector<8x32xf32>
    %c5_87 = arith.constant 5 : index
    %213 = arith.index_cast %162 : i32 to index
    %c0_88 = arith.constant 0 : index
    %c0_89 = arith.constant 0 : index
    %214 = vector.load %arg1[%c5_87, %213, %c0_88, %c0_89] : memref<6x8x8x32xf32, #tpu.memory_space<vmem>>, vector<1x1x8x32xf32>
    %215 = vector.shape_cast %214 : vector<1x1x8x32xf32> to vector<8x32xf32>
    %216 = vector.broadcast %10 : vector<1x32xf32> to vector<8x32xf32>
    %217 = arith.addf %168, %216 : vector<8x32xf32>
    %218 = arith.mulf %203, %217 : vector<8x32xf32>
    %219 = arith.addf %215, %218 : vector<8x32xf32>
    %220 = math.tanh %219 : vector<8x32xf32>
    %221 = arith.subf %156, %194 : vector<8x32xf32>
    %222 = arith.mulf %186, %221 : vector<8x32xf32>
    %223 = arith.addf %194, %222 : vector<8x32xf32>
    %224 = arith.subf %161, %220 : vector<8x32xf32>
    %225 = arith.mulf %212, %224 : vector<8x32xf32>
    %226 = arith.addf %220, %225 : vector<8x32xf32>
    %227 = vector.broadcast %c2_i32 : i32 to vector<8x1xi32>
    %228 = arith.cmpi sgt, %0, %227 : vector<8x1xi32>
    %229 = vector.shape_cast %228 : vector<8x1xi1> to vector<8x1xi1>
    %230 = vector.broadcast %229 : vector<8x1xi1> to vector<8x32xi1>
    %231 = arith.select %230, %223, %156 : vector<8x32xi1>, vector<8x32xf32>
    %232 = vector.broadcast %162 : i32 to vector<8x1xi32>
    %233 = arith.cmpi sgt, %0, %232 : vector<8x1xi32>
    %234 = vector.shape_cast %233 : vector<8x1xi1> to vector<8x1xi1>
    %235 = vector.broadcast %234 : vector<8x1xi1> to vector<8x32xi1>
    %236 = arith.select %235, %226, %161 : vector<8x32xi1>, vector<8x32xf32>
    %c3_i32 = arith.constant 3 : i32
    %c7_i32_90 = arith.constant 7 : i32
    %237 = arith.subi %c7_i32_90, %c3_i32 : i32
    %cst_91 = arith.constant dense<0.000000e+00> : vector<8x32xf32>
    %238 = tpu.matmul %231, %3, %cst_91 {dimension_numbers = #tpu.dot_dimension_numbers<[1], [0], [0], [1], [0, 0, 1, 1], [], []>} : vector<8x32xf32>, vector<32x32xf32>, vector<8x32xf32> -> vector<8x32xf32>
    %cst_92 = arith.constant dense<0.000000e+00> : vector<8x32xf32>
    %239 = tpu.matmul %231, %4, %cst_92 {dimension_numbers = #tpu.dot_dimension_numbers<[1], [0], [0], [1], [0, 0, 1, 1], [], []>} : vector<8x32xf32>, vector<32x32xf32>, vector<8x32xf32> -> vector<8x32xf32>
    %cst_93 = arith.constant dense<0.000000e+00> : vector<8x32xf32>
    %240 = tpu.matmul %231, %5, %cst_93 {dimension_numbers = #tpu.dot_dimension_numbers<[1], [0], [0], [1], [0, 0, 1, 1], [], []>} : vector<8x32xf32>, vector<32x32xf32>, vector<8x32xf32> -> vector<8x32xf32>
    %cst_94 = arith.constant dense<0.000000e+00> : vector<8x32xf32>
    %241 = tpu.matmul %236, %6, %cst_94 {dimension_numbers = #tpu.dot_dimension_numbers<[1], [0], [0], [1], [0, 0, 1, 1], [], []>} : vector<8x32xf32>, vector<32x32xf32>, vector<8x32xf32> -> vector<8x32xf32>
    %cst_95 = arith.constant dense<0.000000e+00> : vector<8x32xf32>
    %242 = tpu.matmul %236, %7, %cst_95 {dimension_numbers = #tpu.dot_dimension_numbers<[1], [0], [0], [1], [0, 0, 1, 1], [], []>} : vector<8x32xf32>, vector<32x32xf32>, vector<8x32xf32> -> vector<8x32xf32>
    %cst_96 = arith.constant dense<0.000000e+00> : vector<8x32xf32>
    %243 = tpu.matmul %236, %8, %cst_96 {dimension_numbers = #tpu.dot_dimension_numbers<[1], [0], [0], [1], [0, 0, 1, 1], [], []>} : vector<8x32xf32>, vector<32x32xf32>, vector<8x32xf32> -> vector<8x32xf32>
    %c0_97 = arith.constant 0 : index
    %244 = arith.index_cast %c3_i32 : i32 to index
    %c0_98 = arith.constant 0 : index
    %c0_99 = arith.constant 0 : index
    %245 = vector.load %arg1[%c0_97, %244, %c0_98, %c0_99] : memref<6x8x8x32xf32, #tpu.memory_space<vmem>>, vector<1x1x8x32xf32>
    %246 = vector.shape_cast %245 : vector<1x1x8x32xf32> to vector<8x32xf32>
    %247 = arith.addf %246, %238 : vector<8x32xf32>
    %248 = arith.negf %247 : vector<8x32xf32>
    %249 = math.exp %248 : vector<8x32xf32>
    %cst_100 = arith.constant 1.000000e+00 : f32
    %250 = vector.broadcast %cst_100 : f32 to vector<8x32xf32>
    %251 = arith.addf %250, %249 : vector<8x32xf32>
    %252 = arith.divf %250, %251 : vector<8x32xf32>
    %c1_101 = arith.constant 1 : index
    %253 = arith.index_cast %c3_i32 : i32 to index
    %c0_102 = arith.constant 0 : index
    %c0_103 = arith.constant 0 : index
    %254 = vector.load %arg1[%c1_101, %253, %c0_102, %c0_103] : memref<6x8x8x32xf32, #tpu.memory_space<vmem>>, vector<1x1x8x32xf32>
    %255 = vector.shape_cast %254 : vector<1x1x8x32xf32> to vector<8x32xf32>
    %256 = arith.addf %255, %239 : vector<8x32xf32>
    %257 = arith.negf %256 : vector<8x32xf32>
    %258 = math.exp %257 : vector<8x32xf32>
    %cst_104 = arith.constant 1.000000e+00 : f32
    %259 = vector.broadcast %cst_104 : f32 to vector<8x32xf32>
    %260 = arith.addf %259, %258 : vector<8x32xf32>
    %261 = arith.divf %259, %260 : vector<8x32xf32>
    %c2_105 = arith.constant 2 : index
    %262 = arith.index_cast %c3_i32 : i32 to index
    %c0_106 = arith.constant 0 : index
    %c0_107 = arith.constant 0 : index
    %263 = vector.load %arg1[%c2_105, %262, %c0_106, %c0_107] : memref<6x8x8x32xf32, #tpu.memory_space<vmem>>, vector<1x1x8x32xf32>
    %264 = vector.shape_cast %263 : vector<1x1x8x32xf32> to vector<8x32xf32>
    %265 = vector.broadcast %9 : vector<1x32xf32> to vector<8x32xf32>
    %266 = arith.addf %240, %265 : vector<8x32xf32>
    %267 = arith.mulf %252, %266 : vector<8x32xf32>
    %268 = arith.addf %264, %267 : vector<8x32xf32>
    %269 = math.tanh %268 : vector<8x32xf32>
    %c3_108 = arith.constant 3 : index
    %270 = arith.index_cast %237 : i32 to index
    %c0_109 = arith.constant 0 : index
    %c0_110 = arith.constant 0 : index
    %271 = vector.load %arg1[%c3_108, %270, %c0_109, %c0_110] : memref<6x8x8x32xf32, #tpu.memory_space<vmem>>, vector<1x1x8x32xf32>
    %272 = vector.shape_cast %271 : vector<1x1x8x32xf32> to vector<8x32xf32>
    %273 = arith.addf %272, %241 : vector<8x32xf32>
    %274 = arith.negf %273 : vector<8x32xf32>
    %275 = math.exp %274 : vector<8x32xf32>
    %cst_111 = arith.constant 1.000000e+00 : f32
    %276 = vector.broadcast %cst_111 : f32 to vector<8x32xf32>
    %277 = arith.addf %276, %275 : vector<8x32xf32>
    %278 = arith.divf %276, %277 : vector<8x32xf32>
    %c4_112 = arith.constant 4 : index
    %279 = arith.index_cast %237 : i32 to index
    %c0_113 = arith.constant 0 : index
    %c0_114 = arith.constant 0 : index
    %280 = vector.load %arg1[%c4_112, %279, %c0_113, %c0_114] : memref<6x8x8x32xf32, #tpu.memory_space<vmem>>, vector<1x1x8x32xf32>
    %281 = vector.shape_cast %280 : vector<1x1x8x32xf32> to vector<8x32xf32>
    %282 = arith.addf %281, %242 : vector<8x32xf32>
    %283 = arith.negf %282 : vector<8x32xf32>
    %284 = math.exp %283 : vector<8x32xf32>
    %cst_115 = arith.constant 1.000000e+00 : f32
    %285 = vector.broadcast %cst_115 : f32 to vector<8x32xf32>
    %286 = arith.addf %285, %284 : vector<8x32xf32>
    %287 = arith.divf %285, %286 : vector<8x32xf32>
    %c5_116 = arith.constant 5 : index
    %288 = arith.index_cast %237 : i32 to index
    %c0_117 = arith.constant 0 : index
    %c0_118 = arith.constant 0 : index
    %289 = vector.load %arg1[%c5_116, %288, %c0_117, %c0_118] : memref<6x8x8x32xf32, #tpu.memory_space<vmem>>, vector<1x1x8x32xf32>
    %290 = vector.shape_cast %289 : vector<1x1x8x32xf32> to vector<8x32xf32>
    %291 = vector.broadcast %10 : vector<1x32xf32> to vector<8x32xf32>
    %292 = arith.addf %243, %291 : vector<8x32xf32>
    %293 = arith.mulf %278, %292 : vector<8x32xf32>
    %294 = arith.addf %290, %293 : vector<8x32xf32>
    %295 = math.tanh %294 : vector<8x32xf32>
    %296 = arith.subf %231, %269 : vector<8x32xf32>
    %297 = arith.mulf %261, %296 : vector<8x32xf32>
    %298 = arith.addf %269, %297 : vector<8x32xf32>
    %299 = arith.subf %236, %295 : vector<8x32xf32>
    %300 = arith.mulf %287, %299 : vector<8x32xf32>
    %301 = arith.addf %295, %300 : vector<8x32xf32>
    %302 = vector.broadcast %c3_i32 : i32 to vector<8x1xi32>
    %303 = arith.cmpi sgt, %0, %302 : vector<8x1xi32>
    %304 = vector.shape_cast %303 : vector<8x1xi1> to vector<8x1xi1>
    %305 = vector.broadcast %304 : vector<8x1xi1> to vector<8x32xi1>
    %306 = arith.select %305, %298, %231 : vector<8x32xi1>, vector<8x32xf32>
    %307 = vector.broadcast %237 : i32 to vector<8x1xi32>
    %308 = arith.cmpi sgt, %0, %307 : vector<8x1xi32>
    %309 = vector.shape_cast %308 : vector<8x1xi1> to vector<8x1xi1>
    %310 = vector.broadcast %309 : vector<8x1xi1> to vector<8x32xi1>
    %311 = arith.select %310, %301, %236 : vector<8x32xi1>, vector<8x32xf32>
    %c4_i32 = arith.constant 4 : i32
    %c7_i32_119 = arith.constant 7 : i32
    %312 = arith.subi %c7_i32_119, %c4_i32 : i32
    %cst_120 = arith.constant dense<0.000000e+00> : vector<8x32xf32>
    %313 = tpu.matmul %306, %3, %cst_120 {dimension_numbers = #tpu.dot_dimension_numbers<[1], [0], [0], [1], [0, 0, 1, 1], [], []>} : vector<8x32xf32>, vector<32x32xf32>, vector<8x32xf32> -> vector<8x32xf32>
    %cst_121 = arith.constant dense<0.000000e+00> : vector<8x32xf32>
    %314 = tpu.matmul %306, %4, %cst_121 {dimension_numbers = #tpu.dot_dimension_numbers<[1], [0], [0], [1], [0, 0, 1, 1], [], []>} : vector<8x32xf32>, vector<32x32xf32>, vector<8x32xf32> -> vector<8x32xf32>
    %cst_122 = arith.constant dense<0.000000e+00> : vector<8x32xf32>
    %315 = tpu.matmul %306, %5, %cst_122 {dimension_numbers = #tpu.dot_dimension_numbers<[1], [0], [0], [1], [0, 0, 1, 1], [], []>} : vector<8x32xf32>, vector<32x32xf32>, vector<8x32xf32> -> vector<8x32xf32>
    %cst_123 = arith.constant dense<0.000000e+00> : vector<8x32xf32>
    %316 = tpu.matmul %311, %6, %cst_123 {dimension_numbers = #tpu.dot_dimension_numbers<[1], [0], [0], [1], [0, 0, 1, 1], [], []>} : vector<8x32xf32>, vector<32x32xf32>, vector<8x32xf32> -> vector<8x32xf32>
    %cst_124 = arith.constant dense<0.000000e+00> : vector<8x32xf32>
    %317 = tpu.matmul %311, %7, %cst_124 {dimension_numbers = #tpu.dot_dimension_numbers<[1], [0], [0], [1], [0, 0, 1, 1], [], []>} : vector<8x32xf32>, vector<32x32xf32>, vector<8x32xf32> -> vector<8x32xf32>
    %cst_125 = arith.constant dense<0.000000e+00> : vector<8x32xf32>
    %318 = tpu.matmul %311, %8, %cst_125 {dimension_numbers = #tpu.dot_dimension_numbers<[1], [0], [0], [1], [0, 0, 1, 1], [], []>} : vector<8x32xf32>, vector<32x32xf32>, vector<8x32xf32> -> vector<8x32xf32>
    %c0_126 = arith.constant 0 : index
    %319 = arith.index_cast %c4_i32 : i32 to index
    %c0_127 = arith.constant 0 : index
    %c0_128 = arith.constant 0 : index
    %320 = vector.load %arg1[%c0_126, %319, %c0_127, %c0_128] : memref<6x8x8x32xf32, #tpu.memory_space<vmem>>, vector<1x1x8x32xf32>
    %321 = vector.shape_cast %320 : vector<1x1x8x32xf32> to vector<8x32xf32>
    %322 = arith.addf %321, %313 : vector<8x32xf32>
    %323 = arith.negf %322 : vector<8x32xf32>
    %324 = math.exp %323 : vector<8x32xf32>
    %cst_129 = arith.constant 1.000000e+00 : f32
    %325 = vector.broadcast %cst_129 : f32 to vector<8x32xf32>
    %326 = arith.addf %325, %324 : vector<8x32xf32>
    %327 = arith.divf %325, %326 : vector<8x32xf32>
    %c1_130 = arith.constant 1 : index
    %328 = arith.index_cast %c4_i32 : i32 to index
    %c0_131 = arith.constant 0 : index
    %c0_132 = arith.constant 0 : index
    %329 = vector.load %arg1[%c1_130, %328, %c0_131, %c0_132] : memref<6x8x8x32xf32, #tpu.memory_space<vmem>>, vector<1x1x8x32xf32>
    %330 = vector.shape_cast %329 : vector<1x1x8x32xf32> to vector<8x32xf32>
    %331 = arith.addf %330, %314 : vector<8x32xf32>
    %332 = arith.negf %331 : vector<8x32xf32>
    %333 = math.exp %332 : vector<8x32xf32>
    %cst_133 = arith.constant 1.000000e+00 : f32
    %334 = vector.broadcast %cst_133 : f32 to vector<8x32xf32>
    %335 = arith.addf %334, %333 : vector<8x32xf32>
    %336 = arith.divf %334, %335 : vector<8x32xf32>
    %c2_134 = arith.constant 2 : index
    %337 = arith.index_cast %c4_i32 : i32 to index
    %c0_135 = arith.constant 0 : index
    %c0_136 = arith.constant 0 : index
    %338 = vector.load %arg1[%c2_134, %337, %c0_135, %c0_136] : memref<6x8x8x32xf32, #tpu.memory_space<vmem>>, vector<1x1x8x32xf32>
    %339 = vector.shape_cast %338 : vector<1x1x8x32xf32> to vector<8x32xf32>
    %340 = vector.broadcast %9 : vector<1x32xf32> to vector<8x32xf32>
    %341 = arith.addf %315, %340 : vector<8x32xf32>
    %342 = arith.mulf %327, %341 : vector<8x32xf32>
    %343 = arith.addf %339, %342 : vector<8x32xf32>
    %344 = math.tanh %343 : vector<8x32xf32>
    %c3_137 = arith.constant 3 : index
    %345 = arith.index_cast %312 : i32 to index
    %c0_138 = arith.constant 0 : index
    %c0_139 = arith.constant 0 : index
    %346 = vector.load %arg1[%c3_137, %345, %c0_138, %c0_139] : memref<6x8x8x32xf32, #tpu.memory_space<vmem>>, vector<1x1x8x32xf32>
    %347 = vector.shape_cast %346 : vector<1x1x8x32xf32> to vector<8x32xf32>
    %348 = arith.addf %347, %316 : vector<8x32xf32>
    %349 = arith.negf %348 : vector<8x32xf32>
    %350 = math.exp %349 : vector<8x32xf32>
    %cst_140 = arith.constant 1.000000e+00 : f32
    %351 = vector.broadcast %cst_140 : f32 to vector<8x32xf32>
    %352 = arith.addf %351, %350 : vector<8x32xf32>
    %353 = arith.divf %351, %352 : vector<8x32xf32>
    %c4_141 = arith.constant 4 : index
    %354 = arith.index_cast %312 : i32 to index
    %c0_142 = arith.constant 0 : index
    %c0_143 = arith.constant 0 : index
    %355 = vector.load %arg1[%c4_141, %354, %c0_142, %c0_143] : memref<6x8x8x32xf32, #tpu.memory_space<vmem>>, vector<1x1x8x32xf32>
    %356 = vector.shape_cast %355 : vector<1x1x8x32xf32> to vector<8x32xf32>
    %357 = arith.addf %356, %317 : vector<8x32xf32>
    %358 = arith.negf %357 : vector<8x32xf32>
    %359 = math.exp %358 : vector<8x32xf32>
    %cst_144 = arith.constant 1.000000e+00 : f32
    %360 = vector.broadcast %cst_144 : f32 to vector<8x32xf32>
    %361 = arith.addf %360, %359 : vector<8x32xf32>
    %362 = arith.divf %360, %361 : vector<8x32xf32>
    %c5_145 = arith.constant 5 : index
    %363 = arith.index_cast %312 : i32 to index
    %c0_146 = arith.constant 0 : index
    %c0_147 = arith.constant 0 : index
    %364 = vector.load %arg1[%c5_145, %363, %c0_146, %c0_147] : memref<6x8x8x32xf32, #tpu.memory_space<vmem>>, vector<1x1x8x32xf32>
    %365 = vector.shape_cast %364 : vector<1x1x8x32xf32> to vector<8x32xf32>
    %366 = vector.broadcast %10 : vector<1x32xf32> to vector<8x32xf32>
    %367 = arith.addf %318, %366 : vector<8x32xf32>
    %368 = arith.mulf %353, %367 : vector<8x32xf32>
    %369 = arith.addf %365, %368 : vector<8x32xf32>
    %370 = math.tanh %369 : vector<8x32xf32>
    %371 = arith.subf %306, %344 : vector<8x32xf32>
    %372 = arith.mulf %336, %371 : vector<8x32xf32>
    %373 = arith.addf %344, %372 : vector<8x32xf32>
    %374 = arith.subf %311, %370 : vector<8x32xf32>
    %375 = arith.mulf %362, %374 : vector<8x32xf32>
    %376 = arith.addf %370, %375 : vector<8x32xf32>
    %377 = vector.broadcast %c4_i32 : i32 to vector<8x1xi32>
    %378 = arith.cmpi sgt, %0, %377 : vector<8x1xi32>
    %379 = vector.shape_cast %378 : vector<8x1xi1> to vector<8x1xi1>
    %380 = vector.broadcast %379 : vector<8x1xi1> to vector<8x32xi1>
    %381 = arith.select %380, %373, %306 : vector<8x32xi1>, vector<8x32xf32>
    %382 = vector.broadcast %312 : i32 to vector<8x1xi32>
    %383 = arith.cmpi sgt, %0, %382 : vector<8x1xi32>
    %384 = vector.shape_cast %383 : vector<8x1xi1> to vector<8x1xi1>
    %385 = vector.broadcast %384 : vector<8x1xi1> to vector<8x32xi1>
    %386 = arith.select %385, %376, %311 : vector<8x32xi1>, vector<8x32xf32>
    %c5_i32 = arith.constant 5 : i32
    %c7_i32_148 = arith.constant 7 : i32
    %387 = arith.subi %c7_i32_148, %c5_i32 : i32
    %cst_149 = arith.constant dense<0.000000e+00> : vector<8x32xf32>
    %388 = tpu.matmul %381, %3, %cst_149 {dimension_numbers = #tpu.dot_dimension_numbers<[1], [0], [0], [1], [0, 0, 1, 1], [], []>} : vector<8x32xf32>, vector<32x32xf32>, vector<8x32xf32> -> vector<8x32xf32>
    %cst_150 = arith.constant dense<0.000000e+00> : vector<8x32xf32>
    %389 = tpu.matmul %381, %4, %cst_150 {dimension_numbers = #tpu.dot_dimension_numbers<[1], [0], [0], [1], [0, 0, 1, 1], [], []>} : vector<8x32xf32>, vector<32x32xf32>, vector<8x32xf32> -> vector<8x32xf32>
    %cst_151 = arith.constant dense<0.000000e+00> : vector<8x32xf32>
    %390 = tpu.matmul %381, %5, %cst_151 {dimension_numbers = #tpu.dot_dimension_numbers<[1], [0], [0], [1], [0, 0, 1, 1], [], []>} : vector<8x32xf32>, vector<32x32xf32>, vector<8x32xf32> -> vector<8x32xf32>
    %cst_152 = arith.constant dense<0.000000e+00> : vector<8x32xf32>
    %391 = tpu.matmul %386, %6, %cst_152 {dimension_numbers = #tpu.dot_dimension_numbers<[1], [0], [0], [1], [0, 0, 1, 1], [], []>} : vector<8x32xf32>, vector<32x32xf32>, vector<8x32xf32> -> vector<8x32xf32>
    %cst_153 = arith.constant dense<0.000000e+00> : vector<8x32xf32>
    %392 = tpu.matmul %386, %7, %cst_153 {dimension_numbers = #tpu.dot_dimension_numbers<[1], [0], [0], [1], [0, 0, 1, 1], [], []>} : vector<8x32xf32>, vector<32x32xf32>, vector<8x32xf32> -> vector<8x32xf32>
    %cst_154 = arith.constant dense<0.000000e+00> : vector<8x32xf32>
    %393 = tpu.matmul %386, %8, %cst_154 {dimension_numbers = #tpu.dot_dimension_numbers<[1], [0], [0], [1], [0, 0, 1, 1], [], []>} : vector<8x32xf32>, vector<32x32xf32>, vector<8x32xf32> -> vector<8x32xf32>
    %c0_155 = arith.constant 0 : index
    %394 = arith.index_cast %c5_i32 : i32 to index
    %c0_156 = arith.constant 0 : index
    %c0_157 = arith.constant 0 : index
    %395 = vector.load %arg1[%c0_155, %394, %c0_156, %c0_157] : memref<6x8x8x32xf32, #tpu.memory_space<vmem>>, vector<1x1x8x32xf32>
    %396 = vector.shape_cast %395 : vector<1x1x8x32xf32> to vector<8x32xf32>
    %397 = arith.addf %396, %388 : vector<8x32xf32>
    %398 = arith.negf %397 : vector<8x32xf32>
    %399 = math.exp %398 : vector<8x32xf32>
    %cst_158 = arith.constant 1.000000e+00 : f32
    %400 = vector.broadcast %cst_158 : f32 to vector<8x32xf32>
    %401 = arith.addf %400, %399 : vector<8x32xf32>
    %402 = arith.divf %400, %401 : vector<8x32xf32>
    %c1_159 = arith.constant 1 : index
    %403 = arith.index_cast %c5_i32 : i32 to index
    %c0_160 = arith.constant 0 : index
    %c0_161 = arith.constant 0 : index
    %404 = vector.load %arg1[%c1_159, %403, %c0_160, %c0_161] : memref<6x8x8x32xf32, #tpu.memory_space<vmem>>, vector<1x1x8x32xf32>
    %405 = vector.shape_cast %404 : vector<1x1x8x32xf32> to vector<8x32xf32>
    %406 = arith.addf %405, %389 : vector<8x32xf32>
    %407 = arith.negf %406 : vector<8x32xf32>
    %408 = math.exp %407 : vector<8x32xf32>
    %cst_162 = arith.constant 1.000000e+00 : f32
    %409 = vector.broadcast %cst_162 : f32 to vector<8x32xf32>
    %410 = arith.addf %409, %408 : vector<8x32xf32>
    %411 = arith.divf %409, %410 : vector<8x32xf32>
    %c2_163 = arith.constant 2 : index
    %412 = arith.index_cast %c5_i32 : i32 to index
    %c0_164 = arith.constant 0 : index
    %c0_165 = arith.constant 0 : index
    %413 = vector.load %arg1[%c2_163, %412, %c0_164, %c0_165] : memref<6x8x8x32xf32, #tpu.memory_space<vmem>>, vector<1x1x8x32xf32>
    %414 = vector.shape_cast %413 : vector<1x1x8x32xf32> to vector<8x32xf32>
    %415 = vector.broadcast %9 : vector<1x32xf32> to vector<8x32xf32>
    %416 = arith.addf %390, %415 : vector<8x32xf32>
    %417 = arith.mulf %402, %416 : vector<8x32xf32>
    %418 = arith.addf %414, %417 : vector<8x32xf32>
    %419 = math.tanh %418 : vector<8x32xf32>
    %c3_166 = arith.constant 3 : index
    %420 = arith.index_cast %387 : i32 to index
    %c0_167 = arith.constant 0 : index
    %c0_168 = arith.constant 0 : index
    %421 = vector.load %arg1[%c3_166, %420, %c0_167, %c0_168] : memref<6x8x8x32xf32, #tpu.memory_space<vmem>>, vector<1x1x8x32xf32>
    %422 = vector.shape_cast %421 : vector<1x1x8x32xf32> to vector<8x32xf32>
    %423 = arith.addf %422, %391 : vector<8x32xf32>
    %424 = arith.negf %423 : vector<8x32xf32>
    %425 = math.exp %424 : vector<8x32xf32>
    %cst_169 = arith.constant 1.000000e+00 : f32
    %426 = vector.broadcast %cst_169 : f32 to vector<8x32xf32>
    %427 = arith.addf %426, %425 : vector<8x32xf32>
    %428 = arith.divf %426, %427 : vector<8x32xf32>
    %c4_170 = arith.constant 4 : index
    %429 = arith.index_cast %387 : i32 to index
    %c0_171 = arith.constant 0 : index
    %c0_172 = arith.constant 0 : index
    %430 = vector.load %arg1[%c4_170, %429, %c0_171, %c0_172] : memref<6x8x8x32xf32, #tpu.memory_space<vmem>>, vector<1x1x8x32xf32>
    %431 = vector.shape_cast %430 : vector<1x1x8x32xf32> to vector<8x32xf32>
    %432 = arith.addf %431, %392 : vector<8x32xf32>
    %433 = arith.negf %432 : vector<8x32xf32>
    %434 = math.exp %433 : vector<8x32xf32>
    %cst_173 = arith.constant 1.000000e+00 : f32
    %435 = vector.broadcast %cst_173 : f32 to vector<8x32xf32>
    %436 = arith.addf %435, %434 : vector<8x32xf32>
    %437 = arith.divf %435, %436 : vector<8x32xf32>
    %c5_174 = arith.constant 5 : index
    %438 = arith.index_cast %387 : i32 to index
    %c0_175 = arith.constant 0 : index
    %c0_176 = arith.constant 0 : index
    %439 = vector.load %arg1[%c5_174, %438, %c0_175, %c0_176] : memref<6x8x8x32xf32, #tpu.memory_space<vmem>>, vector<1x1x8x32xf32>
    %440 = vector.shape_cast %439 : vector<1x1x8x32xf32> to vector<8x32xf32>
    %441 = vector.broadcast %10 : vector<1x32xf32> to vector<8x32xf32>
    %442 = arith.addf %393, %441 : vector<8x32xf32>
    %443 = arith.mulf %428, %442 : vector<8x32xf32>
    %444 = arith.addf %440, %443 : vector<8x32xf32>
    %445 = math.tanh %444 : vector<8x32xf32>
    %446 = arith.subf %381, %419 : vector<8x32xf32>
    %447 = arith.mulf %411, %446 : vector<8x32xf32>
    %448 = arith.addf %419, %447 : vector<8x32xf32>
    %449 = arith.subf %386, %445 : vector<8x32xf32>
    %450 = arith.mulf %437, %449 : vector<8x32xf32>
    %451 = arith.addf %445, %450 : vector<8x32xf32>
    %452 = vector.broadcast %c5_i32 : i32 to vector<8x1xi32>
    %453 = arith.cmpi sgt, %0, %452 : vector<8x1xi32>
    %454 = vector.shape_cast %453 : vector<8x1xi1> to vector<8x1xi1>
    %455 = vector.broadcast %454 : vector<8x1xi1> to vector<8x32xi1>
    %456 = arith.select %455, %448, %381 : vector<8x32xi1>, vector<8x32xf32>
    %457 = vector.broadcast %387 : i32 to vector<8x1xi32>
    %458 = arith.cmpi sgt, %0, %457 : vector<8x1xi32>
    %459 = vector.shape_cast %458 : vector<8x1xi1> to vector<8x1xi1>
    %460 = vector.broadcast %459 : vector<8x1xi1> to vector<8x32xi1>
    %461 = arith.select %460, %451, %386 : vector<8x32xi1>, vector<8x32xf32>
    %c6_i32 = arith.constant 6 : i32
    %c7_i32_177 = arith.constant 7 : i32
    %462 = arith.subi %c7_i32_177, %c6_i32 : i32
    %cst_178 = arith.constant dense<0.000000e+00> : vector<8x32xf32>
    %463 = tpu.matmul %456, %3, %cst_178 {dimension_numbers = #tpu.dot_dimension_numbers<[1], [0], [0], [1], [0, 0, 1, 1], [], []>} : vector<8x32xf32>, vector<32x32xf32>, vector<8x32xf32> -> vector<8x32xf32>
    %cst_179 = arith.constant dense<0.000000e+00> : vector<8x32xf32>
    %464 = tpu.matmul %456, %4, %cst_179 {dimension_numbers = #tpu.dot_dimension_numbers<[1], [0], [0], [1], [0, 0, 1, 1], [], []>} : vector<8x32xf32>, vector<32x32xf32>, vector<8x32xf32> -> vector<8x32xf32>
    %cst_180 = arith.constant dense<0.000000e+00> : vector<8x32xf32>
    %465 = tpu.matmul %456, %5, %cst_180 {dimension_numbers = #tpu.dot_dimension_numbers<[1], [0], [0], [1], [0, 0, 1, 1], [], []>} : vector<8x32xf32>, vector<32x32xf32>, vector<8x32xf32> -> vector<8x32xf32>
    %cst_181 = arith.constant dense<0.000000e+00> : vector<8x32xf32>
    %466 = tpu.matmul %461, %6, %cst_181 {dimension_numbers = #tpu.dot_dimension_numbers<[1], [0], [0], [1], [0, 0, 1, 1], [], []>} : vector<8x32xf32>, vector<32x32xf32>, vector<8x32xf32> -> vector<8x32xf32>
    %cst_182 = arith.constant dense<0.000000e+00> : vector<8x32xf32>
    %467 = tpu.matmul %461, %7, %cst_182 {dimension_numbers = #tpu.dot_dimension_numbers<[1], [0], [0], [1], [0, 0, 1, 1], [], []>} : vector<8x32xf32>, vector<32x32xf32>, vector<8x32xf32> -> vector<8x32xf32>
    %cst_183 = arith.constant dense<0.000000e+00> : vector<8x32xf32>
    %468 = tpu.matmul %461, %8, %cst_183 {dimension_numbers = #tpu.dot_dimension_numbers<[1], [0], [0], [1], [0, 0, 1, 1], [], []>} : vector<8x32xf32>, vector<32x32xf32>, vector<8x32xf32> -> vector<8x32xf32>
    %c0_184 = arith.constant 0 : index
    %469 = arith.index_cast %c6_i32 : i32 to index
    %c0_185 = arith.constant 0 : index
    %c0_186 = arith.constant 0 : index
    %470 = vector.load %arg1[%c0_184, %469, %c0_185, %c0_186] : memref<6x8x8x32xf32, #tpu.memory_space<vmem>>, vector<1x1x8x32xf32>
    %471 = vector.shape_cast %470 : vector<1x1x8x32xf32> to vector<8x32xf32>
    %472 = arith.addf %471, %463 : vector<8x32xf32>
    %473 = arith.negf %472 : vector<8x32xf32>
    %474 = math.exp %473 : vector<8x32xf32>
    %cst_187 = arith.constant 1.000000e+00 : f32
    %475 = vector.broadcast %cst_187 : f32 to vector<8x32xf32>
    %476 = arith.addf %475, %474 : vector<8x32xf32>
    %477 = arith.divf %475, %476 : vector<8x32xf32>
    %c1_188 = arith.constant 1 : index
    %478 = arith.index_cast %c6_i32 : i32 to index
    %c0_189 = arith.constant 0 : index
    %c0_190 = arith.constant 0 : index
    %479 = vector.load %arg1[%c1_188, %478, %c0_189, %c0_190] : memref<6x8x8x32xf32, #tpu.memory_space<vmem>>, vector<1x1x8x32xf32>
    %480 = vector.shape_cast %479 : vector<1x1x8x32xf32> to vector<8x32xf32>
    %481 = arith.addf %480, %464 : vector<8x32xf32>
    %482 = arith.negf %481 : vector<8x32xf32>
    %483 = math.exp %482 : vector<8x32xf32>
    %cst_191 = arith.constant 1.000000e+00 : f32
    %484 = vector.broadcast %cst_191 : f32 to vector<8x32xf32>
    %485 = arith.addf %484, %483 : vector<8x32xf32>
    %486 = arith.divf %484, %485 : vector<8x32xf32>
    %c2_192 = arith.constant 2 : index
    %487 = arith.index_cast %c6_i32 : i32 to index
    %c0_193 = arith.constant 0 : index
    %c0_194 = arith.constant 0 : index
    %488 = vector.load %arg1[%c2_192, %487, %c0_193, %c0_194] : memref<6x8x8x32xf32, #tpu.memory_space<vmem>>, vector<1x1x8x32xf32>
    %489 = vector.shape_cast %488 : vector<1x1x8x32xf32> to vector<8x32xf32>
    %490 = vector.broadcast %9 : vector<1x32xf32> to vector<8x32xf32>
    %491 = arith.addf %465, %490 : vector<8x32xf32>
    %492 = arith.mulf %477, %491 : vector<8x32xf32>
    %493 = arith.addf %489, %492 : vector<8x32xf32>
    %494 = math.tanh %493 : vector<8x32xf32>
    %c3_195 = arith.constant 3 : index
    %495 = arith.index_cast %462 : i32 to index
    %c0_196 = arith.constant 0 : index
    %c0_197 = arith.constant 0 : index
    %496 = vector.load %arg1[%c3_195, %495, %c0_196, %c0_197] : memref<6x8x8x32xf32, #tpu.memory_space<vmem>>, vector<1x1x8x32xf32>
    %497 = vector.shape_cast %496 : vector<1x1x8x32xf32> to vector<8x32xf32>
    %498 = arith.addf %497, %466 : vector<8x32xf32>
    %499 = arith.negf %498 : vector<8x32xf32>
    %500 = math.exp %499 : vector<8x32xf32>
    %cst_198 = arith.constant 1.000000e+00 : f32
    %501 = vector.broadcast %cst_198 : f32 to vector<8x32xf32>
    %502 = arith.addf %501, %500 : vector<8x32xf32>
    %503 = arith.divf %501, %502 : vector<8x32xf32>
    %c4_199 = arith.constant 4 : index
    %504 = arith.index_cast %462 : i32 to index
    %c0_200 = arith.constant 0 : index
    %c0_201 = arith.constant 0 : index
    %505 = vector.load %arg1[%c4_199, %504, %c0_200, %c0_201] : memref<6x8x8x32xf32, #tpu.memory_space<vmem>>, vector<1x1x8x32xf32>
    %506 = vector.shape_cast %505 : vector<1x1x8x32xf32> to vector<8x32xf32>
    %507 = arith.addf %506, %467 : vector<8x32xf32>
    %508 = arith.negf %507 : vector<8x32xf32>
    %509 = math.exp %508 : vector<8x32xf32>
    %cst_202 = arith.constant 1.000000e+00 : f32
    %510 = vector.broadcast %cst_202 : f32 to vector<8x32xf32>
    %511 = arith.addf %510, %509 : vector<8x32xf32>
    %512 = arith.divf %510, %511 : vector<8x32xf32>
    %c5_203 = arith.constant 5 : index
    %513 = arith.index_cast %462 : i32 to index
    %c0_204 = arith.constant 0 : index
    %c0_205 = arith.constant 0 : index
    %514 = vector.load %arg1[%c5_203, %513, %c0_204, %c0_205] : memref<6x8x8x32xf32, #tpu.memory_space<vmem>>, vector<1x1x8x32xf32>
    %515 = vector.shape_cast %514 : vector<1x1x8x32xf32> to vector<8x32xf32>
    %516 = vector.broadcast %10 : vector<1x32xf32> to vector<8x32xf32>
    %517 = arith.addf %468, %516 : vector<8x32xf32>
    %518 = arith.mulf %503, %517 : vector<8x32xf32>
    %519 = arith.addf %515, %518 : vector<8x32xf32>
    %520 = math.tanh %519 : vector<8x32xf32>
    %521 = arith.subf %456, %494 : vector<8x32xf32>
    %522 = arith.mulf %486, %521 : vector<8x32xf32>
    %523 = arith.addf %494, %522 : vector<8x32xf32>
    %524 = arith.subf %461, %520 : vector<8x32xf32>
    %525 = arith.mulf %512, %524 : vector<8x32xf32>
    %526 = arith.addf %520, %525 : vector<8x32xf32>
    %527 = vector.broadcast %c6_i32 : i32 to vector<8x1xi32>
    %528 = arith.cmpi sgt, %0, %527 : vector<8x1xi32>
    %529 = vector.shape_cast %528 : vector<8x1xi1> to vector<8x1xi1>
    %530 = vector.broadcast %529 : vector<8x1xi1> to vector<8x32xi1>
    %531 = arith.select %530, %523, %456 : vector<8x32xi1>, vector<8x32xf32>
    %532 = vector.broadcast %462 : i32 to vector<8x1xi32>
    %533 = arith.cmpi sgt, %0, %532 : vector<8x1xi32>
    %534 = vector.shape_cast %533 : vector<8x1xi1> to vector<8x1xi1>
    %535 = vector.broadcast %534 : vector<8x1xi1> to vector<8x32xi1>
    %536 = arith.select %535, %526, %461 : vector<8x32xi1>, vector<8x32xf32>
    %c7_i32_206 = arith.constant 7 : i32
    %c7_i32_207 = arith.constant 7 : i32
    %537 = arith.subi %c7_i32_207, %c7_i32_206 : i32
    %cst_208 = arith.constant dense<0.000000e+00> : vector<8x32xf32>
    %538 = tpu.matmul %531, %3, %cst_208 {dimension_numbers = #tpu.dot_dimension_numbers<[1], [0], [0], [1], [0, 0, 1, 1], [], []>} : vector<8x32xf32>, vector<32x32xf32>, vector<8x32xf32> -> vector<8x32xf32>
    %cst_209 = arith.constant dense<0.000000e+00> : vector<8x32xf32>
    %539 = tpu.matmul %531, %4, %cst_209 {dimension_numbers = #tpu.dot_dimension_numbers<[1], [0], [0], [1], [0, 0, 1, 1], [], []>} : vector<8x32xf32>, vector<32x32xf32>, vector<8x32xf32> -> vector<8x32xf32>
    %cst_210 = arith.constant dense<0.000000e+00> : vector<8x32xf32>
    %540 = tpu.matmul %531, %5, %cst_210 {dimension_numbers = #tpu.dot_dimension_numbers<[1], [0], [0], [1], [0, 0, 1, 1], [], []>} : vector<8x32xf32>, vector<32x32xf32>, vector<8x32xf32> -> vector<8x32xf32>
    %cst_211 = arith.constant dense<0.000000e+00> : vector<8x32xf32>
    %541 = tpu.matmul %536, %6, %cst_211 {dimension_numbers = #tpu.dot_dimension_numbers<[1], [0], [0], [1], [0, 0, 1, 1], [], []>} : vector<8x32xf32>, vector<32x32xf32>, vector<8x32xf32> -> vector<8x32xf32>
    %cst_212 = arith.constant dense<0.000000e+00> : vector<8x32xf32>
    %542 = tpu.matmul %536, %7, %cst_212 {dimension_numbers = #tpu.dot_dimension_numbers<[1], [0], [0], [1], [0, 0, 1, 1], [], []>} : vector<8x32xf32>, vector<32x32xf32>, vector<8x32xf32> -> vector<8x32xf32>
    %cst_213 = arith.constant dense<0.000000e+00> : vector<8x32xf32>
    %543 = tpu.matmul %536, %8, %cst_213 {dimension_numbers = #tpu.dot_dimension_numbers<[1], [0], [0], [1], [0, 0, 1, 1], [], []>} : vector<8x32xf32>, vector<32x32xf32>, vector<8x32xf32> -> vector<8x32xf32>
    %c0_214 = arith.constant 0 : index
    %544 = arith.index_cast %c7_i32_206 : i32 to index
    %c0_215 = arith.constant 0 : index
    %c0_216 = arith.constant 0 : index
    %545 = vector.load %arg1[%c0_214, %544, %c0_215, %c0_216] : memref<6x8x8x32xf32, #tpu.memory_space<vmem>>, vector<1x1x8x32xf32>
    %546 = vector.shape_cast %545 : vector<1x1x8x32xf32> to vector<8x32xf32>
    %547 = arith.addf %546, %538 : vector<8x32xf32>
    %548 = arith.negf %547 : vector<8x32xf32>
    %549 = math.exp %548 : vector<8x32xf32>
    %cst_217 = arith.constant 1.000000e+00 : f32
    %550 = vector.broadcast %cst_217 : f32 to vector<8x32xf32>
    %551 = arith.addf %550, %549 : vector<8x32xf32>
    %552 = arith.divf %550, %551 : vector<8x32xf32>
    %c1_218 = arith.constant 1 : index
    %553 = arith.index_cast %c7_i32_206 : i32 to index
    %c0_219 = arith.constant 0 : index
    %c0_220 = arith.constant 0 : index
    %554 = vector.load %arg1[%c1_218, %553, %c0_219, %c0_220] : memref<6x8x8x32xf32, #tpu.memory_space<vmem>>, vector<1x1x8x32xf32>
    %555 = vector.shape_cast %554 : vector<1x1x8x32xf32> to vector<8x32xf32>
    %556 = arith.addf %555, %539 : vector<8x32xf32>
    %557 = arith.negf %556 : vector<8x32xf32>
    %558 = math.exp %557 : vector<8x32xf32>
    %cst_221 = arith.constant 1.000000e+00 : f32
    %559 = vector.broadcast %cst_221 : f32 to vector<8x32xf32>
    %560 = arith.addf %559, %558 : vector<8x32xf32>
    %561 = arith.divf %559, %560 : vector<8x32xf32>
    %c2_222 = arith.constant 2 : index
    %562 = arith.index_cast %c7_i32_206 : i32 to index
    %c0_223 = arith.constant 0 : index
    %c0_224 = arith.constant 0 : index
    %563 = vector.load %arg1[%c2_222, %562, %c0_223, %c0_224] : memref<6x8x8x32xf32, #tpu.memory_space<vmem>>, vector<1x1x8x32xf32>
    %564 = vector.shape_cast %563 : vector<1x1x8x32xf32> to vector<8x32xf32>
    %565 = vector.broadcast %9 : vector<1x32xf32> to vector<8x32xf32>
    %566 = arith.addf %540, %565 : vector<8x32xf32>
    %567 = arith.mulf %552, %566 : vector<8x32xf32>
    %568 = arith.addf %564, %567 : vector<8x32xf32>
    %569 = math.tanh %568 : vector<8x32xf32>
    %c3_225 = arith.constant 3 : index
    %570 = arith.index_cast %537 : i32 to index
    %c0_226 = arith.constant 0 : index
    %c0_227 = arith.constant 0 : index
    %571 = vector.load %arg1[%c3_225, %570, %c0_226, %c0_227] : memref<6x8x8x32xf32, #tpu.memory_space<vmem>>, vector<1x1x8x32xf32>
    %572 = vector.shape_cast %571 : vector<1x1x8x32xf32> to vector<8x32xf32>
    %573 = arith.addf %572, %541 : vector<8x32xf32>
    %574 = arith.negf %573 : vector<8x32xf32>
    %575 = math.exp %574 : vector<8x32xf32>
    %cst_228 = arith.constant 1.000000e+00 : f32
    %576 = vector.broadcast %cst_228 : f32 to vector<8x32xf32>
    %577 = arith.addf %576, %575 : vector<8x32xf32>
    %578 = arith.divf %576, %577 : vector<8x32xf32>
    %c4_229 = arith.constant 4 : index
    %579 = arith.index_cast %537 : i32 to index
    %c0_230 = arith.constant 0 : index
    %c0_231 = arith.constant 0 : index
    %580 = vector.load %arg1[%c4_229, %579, %c0_230, %c0_231] : memref<6x8x8x32xf32, #tpu.memory_space<vmem>>, vector<1x1x8x32xf32>
    %581 = vector.shape_cast %580 : vector<1x1x8x32xf32> to vector<8x32xf32>
    %582 = arith.addf %581, %542 : vector<8x32xf32>
    %583 = arith.negf %582 : vector<8x32xf32>
    %584 = math.exp %583 : vector<8x32xf32>
    %cst_232 = arith.constant 1.000000e+00 : f32
    %585 = vector.broadcast %cst_232 : f32 to vector<8x32xf32>
    %586 = arith.addf %585, %584 : vector<8x32xf32>
    %587 = arith.divf %585, %586 : vector<8x32xf32>
    %c5_233 = arith.constant 5 : index
    %588 = arith.index_cast %537 : i32 to index
    %c0_234 = arith.constant 0 : index
    %c0_235 = arith.constant 0 : index
    %589 = vector.load %arg1[%c5_233, %588, %c0_234, %c0_235] : memref<6x8x8x32xf32, #tpu.memory_space<vmem>>, vector<1x1x8x32xf32>
    %590 = vector.shape_cast %589 : vector<1x1x8x32xf32> to vector<8x32xf32>
    %591 = vector.broadcast %10 : vector<1x32xf32> to vector<8x32xf32>
    %592 = arith.addf %543, %591 : vector<8x32xf32>
    %593 = arith.mulf %578, %592 : vector<8x32xf32>
    %594 = arith.addf %590, %593 : vector<8x32xf32>
    %595 = math.tanh %594 : vector<8x32xf32>
    %596 = arith.subf %531, %569 : vector<8x32xf32>
    %597 = arith.mulf %561, %596 : vector<8x32xf32>
    %598 = arith.addf %569, %597 : vector<8x32xf32>
    %599 = arith.subf %536, %595 : vector<8x32xf32>
    %600 = arith.mulf %587, %599 : vector<8x32xf32>
    %601 = arith.addf %595, %600 : vector<8x32xf32>
    %602 = vector.broadcast %c7_i32_206 : i32 to vector<8x1xi32>
    %603 = arith.cmpi sgt, %0, %602 : vector<8x1xi32>
    %604 = vector.shape_cast %603 : vector<8x1xi1> to vector<8x1xi1>
    %605 = vector.broadcast %604 : vector<8x1xi1> to vector<8x32xi1>
    %606 = arith.select %605, %598, %531 : vector<8x32xi1>, vector<8x32xf32>
    %607 = vector.broadcast %537 : i32 to vector<8x1xi32>
    %608 = arith.cmpi sgt, %0, %607 : vector<8x1xi32>
    %609 = vector.shape_cast %608 : vector<8x1xi1> to vector<8x1xi1>
    %610 = vector.broadcast %609 : vector<8x1xi1> to vector<8x32xi1>
    %611 = arith.select %610, %601, %536 : vector<8x32xi1>, vector<8x32xf32>
    %c8_i32 = arith.constant 8 : i32
    %c0_236 = arith.constant 0 : index
    %c0_237 = arith.constant 0 : index
    %612 = vector.load %arg7[%c0_236, %c0_237] : memref<32x64xf32, #tpu.memory_space<vmem>>, vector<32x64xf32>
    %cst_238 = arith.constant dense<0.000000e+00> : vector<8x64xf32>
    %613 = tpu.matmul %606, %612, %cst_238 {dimension_numbers = #tpu.dot_dimension_numbers<[1], [0], [0], [1], [0, 0, 1, 1], [], []>} : vector<8x32xf32>, vector<32x64xf32>, vector<8x64xf32> -> vector<8x64xf32>
    %c0_239 = arith.constant 0 : index
    %c0_240 = arith.constant 0 : index
    %614 = vector.load %arg8[%c0_239, %c0_240] : memref<32x64xf32, #tpu.memory_space<vmem>>, vector<32x64xf32>
    %cst_241 = arith.constant dense<0.000000e+00> : vector<8x64xf32>
    %615 = tpu.matmul %611, %614, %cst_241 {dimension_numbers = #tpu.dot_dimension_numbers<[1], [0], [0], [1], [0, 0, 1, 1], [], []>} : vector<8x32xf32>, vector<32x64xf32>, vector<8x64xf32> -> vector<8x64xf32>
    %616 = arith.addf %613, %615 : vector<8x64xf32>
    %c0_242 = arith.constant 0 : index
    %c0_243 = arith.constant 0 : index
    %617 = vector.load %arg9[%c0_242, %c0_243] : memref<1x64xf32, #tpu.memory_space<vmem>>, vector<1x64xf32>
    %618 = vector.broadcast %617 : vector<1x64xf32> to vector<8x64xf32>
    %619 = arith.addf %616, %618 : vector<8x64xf32>
    %cst_244 = arith.constant 0.000000e+00 : f32
    %620 = vector.broadcast %cst_244 : f32 to vector<8x64xf32>
    %621 = arith.maximumf %619, %620 : vector<8x64xf32>
    %c0_245 = arith.constant 0 : index
    %c0_246 = arith.constant 0 : index
    %622 = vector.load %arg10[%c0_245, %c0_246] : memref<64x16xf32, #tpu.memory_space<vmem>>, vector<64x16xf32>
    %cst_247 = arith.constant dense<0.000000e+00> : vector<8x16xf32>
    %623 = tpu.matmul %621, %622, %cst_247 {dimension_numbers = #tpu.dot_dimension_numbers<[1], [0], [0], [1], [0, 0, 1, 1], [], []>} : vector<8x64xf32>, vector<64x16xf32>, vector<8x16xf32> -> vector<8x16xf32>
    %c0_248 = arith.constant 0 : index
    %c0_249 = arith.constant 0 : index
    %624 = vector.load %arg11[%c0_248, %c0_249] : memref<1x16xf32, #tpu.memory_space<vmem>>, vector<1x16xf32>
    %625 = vector.broadcast %624 : vector<1x16xf32> to vector<8x16xf32>
    %626 = arith.addf %623, %625 : vector<8x16xf32>
    %cst_250 = arith.constant 0.000000e+00 : f32
    %627 = vector.broadcast %cst_250 : f32 to vector<8x16xf32>
    %628 = arith.maximumf %626, %627 : vector<8x16xf32>
    %c0_251 = arith.constant 0 : index
    %c0_252 = arith.constant 0 : index
    %629 = vector.load %arg12[%c0_251, %c0_252] : memref<16x1xf32, #tpu.memory_space<vmem>>, vector<16x1xf32>
    %cst_253 = arith.constant dense<0.000000e+00> : vector<8x1xf32>
    %630 = tpu.matmul %628, %629, %cst_253 {dimension_numbers = #tpu.dot_dimension_numbers<[1], [0], [0], [1], [0, 0, 1, 1], [], []>} : vector<8x16xf32>, vector<16x1xf32>, vector<8x1xf32> -> vector<8x1xf32>
    %c0_254 = arith.constant 0 : index
    %c0_255 = arith.constant 0 : index
    %631 = vector.load %arg13[%c0_254, %c0_255] : memref<1x1xf32, #tpu.memory_space<vmem>>, vector<1x1xf32>
    %632 = vector.broadcast %631 : vector<1x1xf32> to vector<8x1xf32>
    %633 = arith.addf %630, %632 : vector<8x1xf32>
    %634 = arith.negf %633 : vector<8x1xf32>
    %635 = math.exp %634 : vector<8x1xf32>
    %cst_256 = arith.constant 1.000000e+00 : f32
    %636 = vector.broadcast %cst_256 : f32 to vector<8x1xf32>
    %637 = arith.addf %636, %635 : vector<8x1xf32>
    %638 = arith.divf %636, %637 : vector<8x1xf32>
    %c0_257 = arith.constant 0 : index
    %c0_258 = arith.constant 0 : index
    %639 = vector.load %arg14[%c0_257, %c0_258] : memref<8x1xf32, #tpu.memory_space<vmem>>, vector<8x1xf32>
    tpu.vector_store %arg14[%c0_257, %c0_258], %638 {strides = array<i32>} : memref<8x1xf32, #tpu.memory_space<vmem>>, vector<8x1xf32>,
    return
  }
  func.func @transform_0(%arg0: i32) -> (i32, i32, i32, i32) {
    %c0_i32 = arith.constant 0 : i32
    %c0_i32_0 = arith.constant 0 : i32
    %c0_i32_1 = arith.constant 0 : i32
    %c0_i32_2 = arith.constant 0 : i32
    return %c0_i32, %c0_i32_0, %arg0, %c0_i32_1 : i32, i32, i32, i32
  }
  func.func @transform_1(%arg0: i32) -> (i32, i32) {
    %c0_i32 = arith.constant 0 : i32
    %c0_i32_0 = arith.constant 0 : i32
    return %arg0, %c0_i32 : i32, i32
  }
  func.func @transform_2(%arg0: i32) -> (i32, i32) {
    %c0_i32 = arith.constant 0 : i32
    %c0_i32_0 = arith.constant 0 : i32
    %c0_i32_1 = arith.constant 0 : i32
    return %c0_i32, %c0_i32_0 : i32, i32
  }
  func.func @transform_3(%arg0: i32) -> (i32, i32) {
    %c0_i32 = arith.constant 0 : i32
    %c0_i32_0 = arith.constant 0 : i32
    %c0_i32_1 = arith.constant 0 : i32
    return %c0_i32, %c0_i32_0 : i32, i32
  }
  func.func @transform_4(%arg0: i32) -> (i32, i32) {
    %c0_i32 = arith.constant 0 : i32
    %c0_i32_0 = arith.constant 0 : i32
    %c0_i32_1 = arith.constant 0 : i32
    return %c0_i32, %c0_i32_0 : i32, i32
  }
  func.func @transform_5(%arg0: i32) -> (i32, i32) {
    %c0_i32 = arith.constant 0 : i32
    %c0_i32_0 = arith.constant 0 : i32
    %c0_i32_1 = arith.constant 0 : i32
    return %c0_i32, %c0_i32_0 : i32, i32
  }
  func.func @transform_6(%arg0: i32) -> (i32, i32) {
    %c0_i32 = arith.constant 0 : i32
    %c0_i32_0 = arith.constant 0 : i32
    %c0_i32_1 = arith.constant 0 : i32
    return %c0_i32, %c0_i32_0 : i32, i32
  }
  func.func @transform_7(%arg0: i32) -> (i32, i32) {
    %c0_i32 = arith.constant 0 : i32
    %c0_i32_0 = arith.constant 0 : i32
    %c0_i32_1 = arith.constant 0 : i32
    return %c0_i32, %c0_i32_0 : i32, i32
  }
  func.func @transform_8(%arg0: i32) -> (i32, i32) {
    %c0_i32 = arith.constant 0 : i32
    %c0_i32_0 = arith.constant 0 : i32
    %c0_i32_1 = arith.constant 0 : i32
    return %c0_i32, %c0_i32_0 : i32, i32
  }
  func.func @transform_9(%arg0: i32) -> (i32, i32) {
    %c0_i32 = arith.constant 0 : i32
    %c0_i32_0 = arith.constant 0 : i32
    %c0_i32_1 = arith.constant 0 : i32
    return %c0_i32, %c0_i32_0 : i32, i32
  }
  func.func @transform_10(%arg0: i32) -> (i32, i32) {
    %c0_i32 = arith.constant 0 : i32
    %c0_i32_0 = arith.constant 0 : i32
    %c0_i32_1 = arith.constant 0 : i32
    return %c0_i32, %c0_i32_0 : i32, i32
  }
  func.func @transform_11(%arg0: i32) -> (i32, i32) {
    %c0_i32 = arith.constant 0 : i32
    %c0_i32_0 = arith.constant 0 : i32
    %c0_i32_1 = arith.constant 0 : i32
    return %c0_i32, %c0_i32_0 : i32, i32
  }
  func.func @transform_12(%arg0: i32) -> (i32, i32) {
    %c0_i32 = arith.constant 0 : i32
    %c0_i32_0 = arith.constant 0 : i32
    %c0_i32_1 = arith.constant 0 : i32
    return %c0_i32, %c0_i32_0 : i32, i32
  }
  func.func @transform_13(%arg0: i32) -> (i32, i32) {
    %c0_i32 = arith.constant 0 : i32
    %c0_i32_0 = arith.constant 0 : i32
    return %arg0, %c0_i32 : i32, i32
  }
}

</mosaic_0001>

<bundles_post_ra>
// kernel: _lambda_.1
= control target key start
LH: loop header
LB: loop body
LE: loop exit
PB: predicated region body
PF: predicated region fallthrough
CT: control target
= control target key end

     0   :  { %v5856_v3 = vmov 0.0|0.0   ;;  %vm5857_vm0 = vmmov 0   ;;  %v5858_v4 = vmov 0.0   ;;  %s5859_s20 = smov 96   ;;  %s5860_s24 = smov 64   ;;  %v5861_v18 = vmov 0   ;;  %s6738_s2 = inlined_call_operand.vmem [shape: f32[32,96], index: 2, kind: input, shape index: {}]   ;;  %s6739_s3 = inlined_call_operand.vmem [shape: f32[32,96], index: 3, kind: input, shape index: {}]   ;;  %s6740_s1 = inlined_call_operand.vmem [shape: s32[8,1], index: 1, kind: input, shape index: {}]   ;;  %s6741_s0 = inlined_call_operand.vmem [shape: f32[6,8,8,32], index: 0, kind: input, shape index: {}]   ;;  %s6742_s4 = inlined_call_operand.vmem [shape: f32[1,32], index: 4, kind: input, shape index: {}]   ;;  %s6743_s5 = inlined_call_operand.vmem [shape: f32[1,32], index: 5, kind: input, shape index: {}]   ;;  %s6744_s6 = inlined_call_operand.vmem [shape: f32[32,64], index: 6, kind: input, shape index: {}]   ;;  %s6745_s7 = inlined_call_operand.vmem [shape: f32[32,64], index: 7, kind: input, shape index: {}]   ;;  %s6746_s9 = inlined_call_operand.vmem [shape: f32[64,16], index: 9, kind: input, shape index: {}]   ;;  %s6747_s8 = inlined_call_operand.vmem [shape: f32[1,64], index: 8, kind: input, shape index: {}]   ;;  %s6748_s11 = inlined_call_operand.vmem [shape: f32[16,1], index: 11, kind: input, shape index: {}]   ;;  %s6749_s12 = inlined_call_operand.<no memory space> [shape: f32[1,1], index: 12, kind: input, shape index: {}]   ;;  %s6750_s10 = inlined_call_operand.vmem [shape: f32[1,16], index: 10, kind: input, shape index: {}]   ;;  %s6751_s13 = inlined_call_operand.vmem [shape: f32[8,1], index: 13, kind: output, shape index: {}]  }
   0x1   :  { %v47_v0 = vld [vmem:[%s6738_s2] sm:$0xff]  ;;  %v48_v1 = vld [vmem:[%s6738_s2 + $0x8] sm:$0xff]  ;;  %v49_v2 = vld [vmem:[%s6738_s2 + $0x10] sm:$0xff]  ;;  %5327 = vmatprep.subr.bf16.mxu1 %v5856_v3  ;;  %4759 = vmatprep.mubr.msk.f32.mxu1 %vm5857_vm0, %v5858_v4  ;;  %vm57_vm10 = vcmask 261120  }
   0x2   :  { %v5648_v5 = vpack.i.bf16 %v48_v1, %v47_v0  ;;  %v5944_v6 = vpack.c.bf16 %v48_v1, %v47_v0  ;;  %v50_v7 = vld [vmem:[%s6738_s2 + $0x18] sm:$0xff]  ;;  %v51_v8 = vld [vmem:[%s6739_s3] sm:$0xff]  ;;  %v52_v9 = vld [vmem:[%s6739_s3 + $0x8] sm:$0xff]  ;;  %5339 = vmatprep.subr.bf16.mxu0 %v5856_v3  ;;  %4781 = vmatprep.mubr.msk.f32.mxu0 %vm5857_vm0, %v5858_v4 }
   0x3   :  { %v5658_v10 = vpack.i.bf16 %v52_v9, %v51_v8  ;;  %v5958_v11 = vpack.c.bf16 %v52_v9, %v51_v8  ;;  %v5653_v12 = vpack.i.bf16 %v50_v7, %v49_v2  ;;  %v5960_v13 = vpack.c.bf16 %v50_v7, %v49_v2  ;;  %v53_v14 = vld [vmem:[%s6739_s3 + $0x10] sm:$0xff]  ;;  %v54_v15 = vld [vmem:[%s6739_s3 + $0x18] sm:$0xff]  ;;  %5688 = vset.pattern.permute.xlu0 %v5861_v18  ;;  %v46_v19 = vld [vmem:[%s6740_s1] sm:$0xff] }
   0x4   :  { %5649 = vrot.lane.b32.xlu0 %v5648_v5, %s5859_s20  ;;  %5329 = vmatpush3.bf16.msra.mxu1 %v5944_v6  ;;  %v5969_v16 = vpack.c.bf16 %v54_v15, %v53_v14  ;;  %v5668_v17 = vpack.i.bf16 %v54_v15, %v53_v14  ;;  %vm600_vm1 = vcmp.gt.s32.totalorder %v46_v19, 0  ;;  %vm1099_vm2 = vcmp.gt.s32.totalorder %v46_v19, 6  ;;  %v373_v0 = vld [vmem:[%s6741_s0] sm:$0xff] }
   0x5   :  { %5659 = vrot.lane.b32.xlu1 %v5658_v10, %s5859_s20  ;;  %5330 = vmatprep.subr.bf16.mxu1 %v5856_v3  ;;  %vm607_vm3 = vcmp.gt.s32.totalorder %v46_v19, 7  ;;  %v601_v20 = vsel %vm600_vm1, 1, %v5861_v18  ;;  %vm1092_vm4 = vcmp.gt.s32.totalorder %v46_v19, 1  ;;  %v1100_v22 = vsel %vm1099_vm2, 1, %v5861_v18 }
   0x6   :  { %5341 = vmatpush3.bf16.msra.mxu0 %v5958_v11  ;;  %5689 = vset.pattern.permute.xlu1 %v5861_v18  ;;  %v608_v21 = vsel %vm607_vm3, 1, %v5861_v18  ;;  %v1093_v23 = vsel %vm1092_vm4, 1, %v5861_v18  ;;  %vm1591_vm5 = vcmp.gt.s32.totalorder %v46_v19, 5  ;;  %vm1584_vm6 = vcmp.gt.s32.totalorder %v46_v19, 2 }
   0x7   :  { %5342 = vmatprep.subr.bf16.mxu0 %v5856_v3  ;;  %v1592_v24 = vsel %vm1591_vm5, 1, %v5861_v18  ;;  %v1585_v25 = vsel %vm1584_vm6, 1, %v5861_v18  ;;  %vm2083_vm7 = vcmp.gt.s32.totalorder %v46_v19, 4  ;;  %vm2076_vm8 = vcmp.gt.s32.totalorder %v46_v19, 3 }
   0x8   :  { %5654 = vrot.lane.b32.xlu0 %v5653_v12, %s5859_s20  ;;  %5332 = vmatpush3.bf16.msra.mxu1 %v5960_v13  ;;  %v2084_v26 = vsel %vm2083_vm7, 1, %v5861_v18  ;;  %v2077_v27 = vsel %vm2076_vm8, 1, %v5861_v18  ;;  %vm4272_vm3 = vcmask 130048   ;;  %vm4352_vm4 = vcmask 7168  }
   0x9   :  { %5664 = vrot.lane.b32.xlu1 %v5648_v5, %s5860_s24  ;;  %5333 = vmatprep.subr.bf16.mxu1 %v5856_v3  ;;  %v4363_v5 = vld [vmem:[%s6741_s0 + $0xf8] sm:$0xff] }
   0xa   :  { %5344 = vmatpush3.bf16.msra.mxu0 %v5969_v16 }
   0xb   :  { %5351 = vmatprep.subr.bf16.mxu0 %v5856_v3  ;;  %4760 = vmatmul.mubr.f32.vlgmr.msra.gmra.mrb[0].mxu1 %v5858_v4 }
   0xc   :  { %5669 = vrot.lane.b32.xlu0 %v5668_v17, %s5859_s20  ;;  %4770 = vmatprep.mubr.msk.f32.mxu1 %vm5857_vm0, %v5858_v4 }
   0xd   :  { %5674 = vrot.lane.b32.xlu1 %v5653_v12, %s5860_s24  ;;  %4782 = vmatmul.mubr.f32.vlgmr.msra.gmra.mrb[0].mxu0 %v5858_v4  ;;  %v4359_v12 = vld [vmem:[%s6741_s0 + $0x40] sm:$0xff] }
   0xe   :  { %4803 = vmatprep.mubr.msk.f32.mxu0 %vm5857_vm0, %v5858_v4 }
  0x10   :  { %5679 = vrot.lane.b32.xlu0 %v5658_v10, %s5860_s24 }
  0x11   :  { %5684 = vrot.lane.b32.xlu1 %v5668_v17, %s5860_s24 }
  0x14   :  { %603 = vperm.xlu0 %5688, %v601_v20  }
  0x15   :  { %610 = vperm.xlu1 %5689, %v608_v21   ;;  %v6051_v21 = vld [vmem:[%s6742_s4] ss:$0 sm:$0xff] }
  0x18   :  { %1102 = vperm.xlu0 %5688, %v1100_v22  }
  0x19   :  { %1095 = vperm.xlu1 %5689, %v1093_v23  }
  0x1c   :  { %1594 = vperm.xlu0 %5688, %v1592_v24   ;;  %v4365_v24 = vld [vmem:[%s6741_s0 + $0x138] sm:$0xff] }
  0x1d   :  { %1587 = vperm.xlu1 %5689, %v1585_v25  }
  0x20   :  { %2086 = vperm.xlu0 %5688, %v2084_v26  }
  0x21   :  { %2079 = vperm.xlu1 %5689, %v2077_v27   ;;  %v4361_v27 = vld [vmem:[%s6741_s0 + $0x80] sm:$0xff] }
  0x76   :  { %v5650_v28 = vpop.permute.xlu0 %5649 }
  0x77   :  { %v5652_v29 = vunpack.i.h.bf16 %v5650_v28  ;;  %v5651_v30 = vunpack.i.l.bf16 %v5650_v28  ;;  %v5660_v31 = vpop.permute.xlu1 %5659 }
  0x78   :  { %v5662_v40 = vunpack.i.h.bf16 %v5660_v31  ;;  %v5661_v41 = vunpack.i.l.bf16 %v5660_v31 }
  0x79   :  { %v5987_v32 = vpack.c.bf16 %v5652_v29, %v5651_v30 }
  0x7a   :  { %v5655_v33 = vpop.permute.xlu0 %5654  ;;  %v5998_v49 = vpack.c.bf16 %v5662_v40, %v5661_v41 }
  0x7b   :  { %v5657_v34 = vunpack.i.h.bf16 %v5655_v33  ;;  %v5656_v35 = vunpack.i.l.bf16 %v5655_v33  ;;  %5335 = vmatpush3.bf16.msra.mxu1 %v5987_v32  ;;  %v5665_v36 = vpop.permute.xlu1 %5664 }
  0x7c   :  { %5336 = vmatprep.subr.bf16.mxu1 %v5856_v3  ;;  %v5667_v37 = vunpack.i.h.bf16 %v5665_v36  ;;  %v5666_v38 = vunpack.i.l.bf16 %v5665_v36 }
  0x7d   :  { %v5991_v39 = vpack.c.bf16 %v5657_v34, %v5656_v35  ;;  %v6063_v35 = vld [vmem:[%s6743_s5] ss:$0 sm:$0xff] }
  0x7e   :  { %v5993_v42 = vpack.c.bf16 %v5667_v37, %v5666_v38  ;;  %v5670_v43 = vpop.permute.xlu0 %5669 }
  0x7f   :  { %5338 = vmatpush3.bf16.msra.mxu1 %v5991_v39  ;;  %v5672_v44 = vunpack.i.h.bf16 %v5670_v43  ;;  %v5671_v45 = vunpack.i.l.bf16 %v5670_v43  ;;  %v5675_v46 = vpop.permute.xlu1 %5674 }
  0x80   :  { %5345 = vmatprep.subr.bf16.mxu1 %v5856_v3  ;;  %v5677_v47 = vunpack.i.h.bf16 %v5675_v46  ;;  %v5676_v48 = vunpack.i.l.bf16 %v5675_v46  ;;  %5353 = vmatpush3.bf16.msra.mxu0 %v5993_v42 }
  0x81   :  { %5354 = vmatprep.subr.bf16.mxu0 %v5856_v3  ;;  %v6004_v52 = vpack.c.bf16 %v5672_v44, %v5671_v45  ;;  %v4367_v44 = vld [vmem:[%s6741_s0 + $0x178] sm:$0xff] }
  0x82   :  { %4771 = vmatmul.mubr.f32.vlgmr.msra.gmra.mrb[2].mxu1 %v5858_v4  ;;  %v6002_v50 = vpack.c.bf16 %v5677_v47, %v5676_v48  ;;  %v5680_v51 = vpop.permute.xlu0 %5679 }
  0x83   :  { %5347 = vmatpush3.bf16.msra.mxu1 %v5998_v49  ;;  %v5682_v53 = vunpack.i.h.bf16 %v5680_v51  ;;  %v5681_v54 = vunpack.i.l.bf16 %v5680_v51  ;;  %4792 = vmatprep.mubr.msk.f32.mxu1 %vm5857_vm0, %v5858_v4  ;;  %v5685_v55 = vpop.permute.xlu1 %5684 }
  0x84   :  { %5348 = vmatprep.subr.bf16.mxu1 %v5856_v3  ;;  %5356 = vmatpush3.bf16.msra.mxu0 %v6002_v50  ;;  %v5687_v57 = vunpack.i.h.bf16 %v5685_v55  ;;  %v5686_v58 = vunpack.i.l.bf16 %v5685_v55 }
  0x85   :  { %5363 = vmatprep.subr.bf16.mxu0 %v5856_v3  ;;  %v6012_v56 = vpack.c.bf16 %v5682_v53, %v5681_v54 }
  0x86   :  { %v6022_v59 = vpack.c.bf16 %v5687_v57, %v5686_v58 }
  0x87   :  { %5350 = vmatpush3.bf16.msra.mxu1 %v6004_v52  ;;  %4804 = vmatmul.mubr.f32.vlgmr.msra.gmra.mrb[2].mxu0 %v5858_v4 }
  0x88   :  { %5357 = vmatprep.subr.bf16.mxu1 %v5856_v3  ;;  %5365 = vmatpush3.bf16.msra.mxu0 %v5944_v6 }
  0x89   :  { %5366 = vmatprep.subr.bf16.mxu0 %v5856_v3  ;;  %4825 = vmatprep.mubr.msk.f32.mxu0 %vm5857_vm0, %v5858_v4 }
  0x8a   :  { %4793 = vmatmul.mubr.f32.vlgmr.msra.gmra.mrb[4].mxu1 %v5858_v4 }
  0x8b   :  { %5359 = vmatpush3.bf16.msra.mxu1 %v6012_v56  ;;  %4814 = vmatprep.mubr.msk.f32.mxu1 %vm5857_vm0, %v5858_v4 }
  0x8c   :  { %5360 = vmatprep.subr.bf16.mxu1 %v5856_v3  ;;  %5368 = vmatpush3.bf16.msra.mxu0 %v5960_v13 }
  0x8d   :  { %5375 = vmatprep.subr.bf16.mxu0 %v5856_v3 }
  0x8f   :  { %5362 = vmatpush3.bf16.msra.mxu1 %v6022_v59 }
  0x90   :  { %5369 = vmatprep.subr.bf16.mxu1 %v5856_v3 }
  0x92   :  { %4815 = vmatmul.mubr.f32.vlgmr.msra.gmra.mrb[6].mxu1 %v5858_v4 }
  0x93   :  { %5371 = vmatpush3.bf16.msra.mxu1 %v5987_v32  ;;  %4836 = vmatprep.mubr.msk.f32.mxu1 %vm5857_vm0, %v5858_v4  ;;  %v6069_v55 = vpop.permute.xlu0 %603 }
  0x94   :  { %5372 = vmatprep.subr.bf16.mxu1 %v5856_v3  ;;  %vm605_vm9 = vcmp.eq.s32.totalorder %v6069_v55, 1  ;;  %v4175_v55 = vld [vmem:[%s6746_s9 + $0x10] sm:$0xff] }
  0x97   :  { %5374 = vmatpush3.bf16.msra.mxu1 %v5991_v39 }
  0x98   :  { %5381 = vmatprep.subr.bf16.mxu1 %v5856_v3 }
  0xde   :  { %v127_v60 = vpop.f32.mrb[0].mxu1 }
  0xdf   :  { %v4761_v61 = vpop.f32.mrb[1].mxu1  ;;  %v374_v1 = vadd.f32 %v373_v0, %v127_v60  ;;  %v6084_v0 = vpop.permute.xlu1 %610 }
  0xe0   :  { %v283_v62 = vpop.f32.mrb[0].mxu0  ;;  %vm612_vm11 = vcmp.eq.s32.totalorder %v6084_v0, 1  ;;  %v4173_v0 = vld [vmem:[%s6746_s9] sm:$0xff] }
  0xe1   :  { %v4783_v63 = vpop.f32.mrb[1].mxu0  ;;  %v4358_v2 = vmul.f32 -1.442695, %v374_v1  ;;  %v485_v7 = vadd.f32 %v4363_v5, %v283_v62 }
  0xe3   :  { %5690 = vpow2.f32 %v4358_v2  ;;  %v4364_v8 = vmul.f32 -1.442695, %v485_v7  ;;  %v4373_v7 = vld [vmem:[%s6741_s0 + $0x8] sm:$0xff] }
  0xe5   :  { %5692 = vpow2.f32 %v4364_v8 }
  0xed   :  { %v5691_v9 = vpop.eup %5690 }
  0xee   :  { %v378_v10 = vadd.f32 1.0, %v5691_v9 }
  0xef   :  { %v5693_v14 = vpop.eup %5692 }
  0xf0   :  { %5694 = vrcp.f32 %v378_v10  ;;  %v489_v19 = vadd.f32 1.0, %v5693_v14 }
  0xfa   :  { %v5695_v22 = vpop.eup %5694 }
 0x155   :  { %v213_v15 = vpop.f32.mrb[2].mxu1 }
 0x156   :  { %v383_v17 = vadd.f32 %v4359_v12, %v213_v15  ;;  %v4772_v18 = vpop.f32.mrb[3].mxu1 }
 0x157   :  { %v4379_v18 = vld [vmem:[%s6741_s0 + $0xf0] sm:$0xff] }
 0x158   :  { %v4360_v20 = vmul.f32 -1.442695, %v383_v17  ;;  %v4375_v17 = vld [vmem:[%s6741_s0 + $0x48] sm:$0xff] }
 0x15a   :  { %5696 = vpow2.f32 %v4360_v20  ;;  %v476_v23 = vpop.f32.mrb[2].mxu0 }
 0x15b   :  { %5698 = vrcp.f32 %v489_v19  ;;  %v477_v25 = vadd.f32 %v6051_v21, %v476_v23  ;;  %v4805_v26 = vpop.f32.mrb[3].mxu0 }
 0x15d   :  { %v369_v28 = vpop.f32.mrb[4].mxu1  ;;  %v480_v29 = vmul.f32 %v5695_v22, %v477_v25 }
 0x15e   :  { %v494_v30 = vadd.f32 %v4365_v24, %v369_v28  ;;  %v4794_v31 = vpop.f32.mrb[5].mxu1  ;;  %v4381_v28 = vld [vmem:[%s6741_s0 + $0x130] sm:$0xff] }
 0x15f   :  { %v481_v33 = vadd.f32 %v4361_v27, %v480_v29 }
 0x160   :  { %v4366_v34 = vmul.f32 -1.442695, %v494_v30 }
 0x161   :  { %5700 = vtanh.f32 %v481_v33 }
 0x162   :  { %5702 = vpow2.f32 %v4366_v34 }
 0x164   :  { %v5697_v36 = vpop.eup %5696 }
 0x165   :  { %v5699_v37 = vpop.eup %5698  ;;  %v387_v38 = vadd.f32 1.0, %v5697_v36  ;;  %v587_v40 = vpop.f32.mrb[6].mxu1 }
 0x166   :  { %v588_v41 = vadd.f32 %v6063_v35, %v587_v40  ;;  %v4816_v43 = vpop.f32.mrb[7].mxu1 }
 0x167   :  { %5704 = vrcp.f32 %v387_v38 }
 0x168   :  { %v591_v45 = vmul.f32 %v5699_v37, %v588_v41 }
 0x16a   :  { %v592_v46 = vadd.f32 %v4367_v44, %v591_v45 }
 0x16b   :  { %v5701_v47 = vpop.eup %5700 }
 0x16c   :  { %v5703_v48 = vpop.eup %5702  ;;  %5706 = vtanh.f32 %v592_v46  ;;  %v594_v53 = vsub.f32 0.0, %v5701_v47  ;;  %v4377_v46 = vld [vmem:[%s6741_s0 + $0x88] sm:$0xff] }
 0x16d   :  { %v498_v51 = vadd.f32 1.0, %v5703_v48 }
 0x16f   :  { %5708 = vrcp.f32 %v498_v51 }
 0x171   :  { %v5705_v54 = vpop.eup %5704 }
 0x172   :  { %v595_v57 = vmul.f32 %v5705_v54, %v594_v53 }
 0x174   :  { %v596_v58 = vadd.f32 %v5701_v47, %v595_v57 }
 0x176   :  { %v5707_v60 = vpop.eup %5706  ;;  %v6074_v61 = vsel %vm605_vm9, %v596_v58, 0.0  ;;  %v4383_v58 = vld [vmem:[%s6741_s0 + $0x170] sm:$0xff] }
 0x177   :  { %v597_v62 = vsub.f32 0.0, %v5707_v60  ;;  %4826 = vmatmul.mubr.msk.f32.vlgmr.msra.gmra.mrb[4].mxu0 %vm57_vm10, %v6074_v61  ;;  %4837 = vmatmul.mubr.msk.f32.vlgmr.msra.gmra.mrb[8].mxu1 %vm57_vm10, %v6074_v61 }
 0x178   :  { %5377 = vmatpush3.bf16.msra.mxu0 %v5958_v11  ;;  %5383 = vmatpush3.bf16.msra.mxu1 %v5998_v49 }
 0x179   :  { %v5709_v63 = vpop.eup %5708  ;;  %5378 = vmatprep.subr.bf16.mxu0 %v5856_v3  ;;  %5384 = vmatprep.subr.bf16.mxu1 %v5856_v3 }
 0x17a   :  { %v598_v1 = vmul.f32 %v5709_v63, %v597_v62  ;;  %4847 = vmatprep.mubr.msk.f32.mxu0 %vm5857_vm0, %v5858_v4  ;;  %4858 = vmatprep.mubr.msk.f32.mxu1 %vm5857_vm0, %v5858_v4 }
 0x17c   :  { %v599_v2 = vadd.f32 %v5707_v60, %v598_v1  ;;  %5380 = vmatpush3.bf16.msra.mxu0 %v5969_v16  ;;  %5386 = vmatpush3.bf16.msra.mxu1 %v6004_v52 }
 0x17d   :  { %5387 = vmatprep.subr.bf16.mxu0 %v5856_v3  ;;  %5393 = vmatprep.subr.bf16.mxu1 %v5856_v3 }
 0x17e   :  { %v6097_v5 = vsel %vm612_vm11, %v599_v2, 0.0 }
 0x17f   :  { %4848 = vmatmul.mubr.msk.f32.vlgmr.msra.gmra.mrb[6].mxu0 %vm57_vm10, %v6097_v5  ;;  %4859 = vmatmul.mubr.msk.f32.vlgmr.msra.gmra.mrb[10].mxu1 %vm57_vm10, %v6097_v5 }
 0x180   :  { %5389 = vmatpush3.bf16.msra.mxu0 %v5993_v42  ;;  %5395 = vmatpush3.bf16.msra.mxu1 %v6012_v56 }
 0x181   :  { %5390 = vmatprep.subr.bf16.mxu0 %v5856_v3  ;;  %5396 = vmatprep.subr.bf16.mxu1 %v5856_v3 }
 0x182   :  { %4869 = vmatprep.mubr.msk.f32.mxu0 %vm5857_vm0, %v5858_v4  ;;  %4880 = vmatprep.mubr.msk.f32.mxu1 %vm5857_vm0, %v5858_v4 }
 0x184   :  { %5392 = vmatpush3.bf16.msra.mxu0 %v6002_v50  ;;  %5398 = vmatpush3.bf16.msra.mxu1 %v6022_v59 }
 0x185   :  { %5405 = vmatprep.subr.bf16.mxu1 %v5856_v3  ;;  %5399 = vmatprep.subr.bf16.mxu0 %v5856_v3 }
 0x187   :  { %4870 = vmatmul.mubr.msk.f32.vlgmr.msra.gmra.mrb[8].mxu0 %vm57_vm10, %v6074_v61  ;;  %4881 = vmatmul.mubr.msk.f32.vlgmr.msra.gmra.mrb[12].mxu1 %vm57_vm10, %v6097_v5 }
 0x188   :  { %5407 = vmatpush3.bf16.msra.mxu1 %v5987_v32  ;;  %5401 = vmatpush3.bf16.msra.mxu0 %v5944_v6 }
 0x189   :  { %5408 = vmatprep.subr.bf16.mxu1 %v5856_v3  ;;  %5402 = vmatprep.subr.bf16.mxu0 %v5856_v3 }
 0x18a   :  { %4891 = vmatprep.mubr.msk.f32.mxu0 %vm5857_vm0, %v5858_v4  ;;  %4902 = vmatprep.mubr.msk.f32.mxu1 %vm5857_vm0, %v5858_v4 }
 0x18c   :  { %5410 = vmatpush3.bf16.msra.mxu1 %v5991_v39  ;;  %5404 = vmatpush3.bf16.msra.mxu0 %v5960_v13 }
 0x18d   :  { %5411 = vmatprep.subr.bf16.mxu0 %v5856_v3  ;;  %5417 = vmatprep.subr.bf16.mxu1 %v5856_v3 }
 0x24a   :  { %v683_v8 = vpop.f32.mrb[4].mxu0  ;;  %v753_v9 = vpop.f32.mrb[8].mxu1 }
 0x24b   :  { %v902_v10 = vadd.f32 %v4373_v7, %v683_v8  ;;  %v4827_v12 = vpop.f32.mrb[5].mxu0  ;;  %v4838_v14 = vpop.f32.mrb[9].mxu1  ;;  %v911_v22 = vadd.f32 %v4375_v17, %v753_v9 }
 0x24c   :  { %v6152_v9 = vpop.permute.xlu1 %1095 }
 0x24d   :  { %v4374_v15 = vmul.f32 -1.442695, %v902_v10  ;;  %v4376_v27 = vmul.f32 -1.442695, %v911_v22  ;;  %vm1097_vm12 = vcmp.eq.s32.totalorder %v6152_v9, 1  ;;  %v4014_v9 = vld [vmem:[%s6745_s7] sm:$0xff] }
 0x24f   :  { %5710 = vpow2.f32 %v4374_v15 }
 0x252   :  { %v826_v19 = vpop.f32.mrb[6].mxu0  ;;  %v896_v20 = vpop.f32.mrb[10].mxu1 }
 0x253   :  { %v995_v23 = vadd.f32 %v4379_v18, %v826_v19  ;;  %v4849_v24 = vpop.f32.mrb[7].mxu0  ;;  %v4860_v25 = vpop.f32.mrb[11].mxu1  ;;  %v1004_v34 = vadd.f32 %v4381_v28, %v896_v20  ;;  %v4391_v28 = vld [vmem:[%s6741_s0 + $0x50] sm:$0xff] }
 0x254   :  { %v6173_v18 = vpop.permute.xlu0 %1102 }
 0x255   :  { %v4380_v26 = vmul.f32 -1.442695, %v995_v23  ;;  %v4382_v38 = vmul.f32 -1.442695, %v1004_v34  ;;  %vm1104_vm13 = vcmp.eq.s32.totalorder %v6173_v18, 1 }
 0x257   :  { %5712 = vpow2.f32 %v4380_v26 }
 0x258   :  { %5714 = vpow2.f32 %v4376_v27 }
 0x259   :  { %v5711_v29 = vpop.eup %5710 }
 0x25a   :  { %v906_v30 = vadd.f32 1.0, %v5711_v29  ;;  %v986_v31 = vpop.f32.mrb[8].mxu0  ;;  %v1079_v33 = vpop.f32.mrb[12].mxu1  ;;  %v4395_v29 = vld [vmem:[%s6741_s0 + $0xe8] sm:$0xff] }
 0x25b   :  { %v4871_v36 = vpop.f32.mrb[9].mxu0  ;;  %v4882_v37 = vpop.f32.mrb[13].mxu1  ;;  %v987_v44 = vadd.f32 %v6051_v21, %v986_v31  ;;  %v1080_v54 = vadd.f32 %v6063_v35, %v1079_v33 }
 0x25c   :  { %5716 = vrcp.f32 %v906_v30 }
 0x25d   :  { %5718 = vpow2.f32 %v4382_v38 }
 0x261   :  { %v5713_v40 = vpop.eup %5712 }
 0x262   :  { %v999_v41 = vadd.f32 1.0, %v5713_v40  ;;  %v5715_v43 = vpop.eup %5714 }
 0x263   :  { %v915_v48 = vadd.f32 1.0, %v5715_v43 }
 0x264   :  { %5720 = vrcp.f32 %v999_v41  ;;  %v4397_v41 = vld [vmem:[%s6741_s0 + $0x128] sm:$0xff] }
 0x266   :  { %v5717_v45 = vpop.eup %5716 }
 0x267   :  { %v990_v47 = vmul.f32 %v5717_v45, %v987_v44  ;;  %v5719_v53 = vpop.eup %5718 }
 0x268   :  { %v1008_v62 = vadd.f32 1.0, %v5719_v53 }
 0x269   :  { %v991_v51 = vadd.f32 %v4377_v46, %v990_v47 }
 0x26b   :  { %5722 = vtanh.f32 %v991_v51 }
 0x26c   :  { %5724 = vrcp.f32 %v915_v48 }
 0x26e   :  { %v5721_v57 = vpop.eup %5720 }
 0x26f   :  { %v1083_v60 = vmul.f32 %v5721_v57, %v1080_v54 }
 0x271   :  { %v1084_v63 = vadd.f32 %v4383_v58, %v1083_v60 }
 0x273   :  { %5726 = vtanh.f32 %v1084_v63  ;;  %v4393_v63 = vld [vmem:[%s6741_s0 + $0x90] sm:$0xff] }
 0x274   :  { %5728 = vrcp.f32 %v1008_v62 }
 0x275   :  { %v5723_v1 = vpop.eup %5722 }
 0x276   :  { %v1086_v2 = vsub.f32 %v6074_v61, %v5723_v1  ;;  %v5725_v7 = vpop.eup %5724 }
 0x278   :  { %v1087_v8 = vmul.f32 %v5725_v7, %v1086_v2 }
 0x27a   :  { %v1088_v10 = vadd.f32 %v5723_v1, %v1087_v8 }
 0x27c   :  { %v6158_v12 = vsel %vm1097_vm12, %v1088_v10, %v6074_v61 }
 0x27d   :  { %v5727_v14 = vpop.eup %5726  ;;  %4892 = vmatmul.mubr.msk.f32.vlgmr.msra.gmra.mrb[10].mxu0 %vm57_vm10, %v6158_v12  ;;  %4903 = vmatmul.mubr.msk.f32.vlgmr.msra.gmra.mrb[14].mxu1 %vm57_vm10, %v6158_v12 }
 0x27e   :  { %5413 = vmatpush3.bf16.msra.mxu0 %v5958_v11  ;;  %5419 = vmatpush3.bf16.msra.mxu1 %v5998_v49  ;;  %v1089_v15 = vsub.f32 %v6097_v5, %v5727_v14  ;;  %v5729_v17 = vpop.eup %5728 }
 0x27f   :  { %5414 = vmatprep.subr.bf16.mxu0 %v5856_v3  ;;  %5420 = vmatprep.subr.bf16.mxu1 %v5856_v3 }
 0x280   :  { %4913 = vmatprep.mubr.msk.f32.mxu0 %vm5857_vm0, %v5858_v4  ;;  %4924 = vmatprep.mubr.msk.f32.mxu1 %vm5857_vm0, %v5858_v4  ;;  %v1090_v61 = vmul.f32 %v5729_v17, %v1089_v15  ;;  %v4399_v15 = vld [vmem:[%s6741_s0 + $0x168] sm:$0xff] }
 0x282   :  { %5416 = vmatpush3.bf16.msra.mxu0 %v5969_v16  ;;  %5422 = vmatpush3.bf16.msra.mxu1 %v6004_v52  ;;  %v1091_v19 = vadd.f32 %v5727_v14, %v1090_v61 }
 0x283   :  { %5423 = vmatprep.subr.bf16.mxu0 %v5856_v3  ;;  %5429 = vmatprep.subr.bf16.mxu1 %v5856_v3 }
 0x284   :  { %v6183_v20 = vsel %vm1104_vm13, %v1091_v19, %v6097_v5  ;;  %v4389_v5 = vld [vmem:[%s6741_s0 + $0x10] sm:$0xff] }
 0x285   :  { %4914 = vmatmul.mubr.msk.f32.vlgmr.msra.gmra.mrb[12].mxu0 %vm57_vm10, %v6183_v20  ;;  %4925 = vmatmul.mubr.msk.f32.vlgmr.msra.gmra.mrb[16].mxu1 %vm57_vm10, %v6183_v20 }
 0x286   :  { %5425 = vmatpush3.bf16.msra.mxu0 %v5993_v42  ;;  %5431 = vmatpush3.bf16.msra.mxu1 %v6012_v56 }
 0x287   :  { %5426 = vmatprep.subr.bf16.mxu0 %v5856_v3  ;;  %5432 = vmatprep.subr.bf16.mxu1 %v5856_v3 }
 0x288   :  { %4935 = vmatprep.mubr.msk.f32.mxu0 %vm5857_vm0, %v5858_v4  ;;  %4946 = vmatprep.mubr.msk.f32.mxu1 %vm5857_vm0, %v5858_v4 }
 0x28a   :  { %5428 = vmatpush3.bf16.msra.mxu0 %v6002_v50  ;;  %5434 = vmatpush3.bf16.msra.mxu1 %v6022_v59 }
 0x28b   :  { %5441 = vmatprep.subr.bf16.mxu1 %v5856_v3  ;;  %5435 = vmatprep.subr.bf16.mxu0 %v5856_v3 }
 0x28d   :  { %4936 = vmatmul.mubr.msk.f32.vlgmr.msra.gmra.mrb[14].mxu0 %vm57_vm10, %v6158_v12  ;;  %4947 = vmatmul.mubr.msk.f32.vlgmr.msra.gmra.mrb[18].mxu1 %vm57_vm10, %v6183_v20 }
 0x28e   :  { %5443 = vmatpush3.bf16.msra.mxu1 %v5987_v32  ;;  %5437 = vmatpush3.bf16.msra.mxu0 %v5944_v6 }
 0x28f   :  { %5444 = vmatprep.subr.bf16.mxu1 %v5856_v3  ;;  %5438 = vmatprep.subr.bf16.mxu0 %v5856_v3 }
 0x290   :  { %4957 = vmatprep.mubr.msk.f32.mxu0 %vm5857_vm0, %v5858_v4  ;;  %4968 = vmatprep.mubr.msk.f32.mxu1 %vm5857_vm0, %v5858_v4 }
 0x292   :  { %5446 = vmatpush3.bf16.msra.mxu1 %v5991_v39  ;;  %5440 = vmatpush3.bf16.msra.mxu0 %v5960_v13 }
 0x293   :  { %5447 = vmatprep.subr.bf16.mxu0 %v5856_v3  ;;  %5453 = vmatprep.subr.bf16.mxu1 %v5856_v3 }
 0x350   :  { %v1175_v22 = vpop.f32.mrb[10].mxu0  ;;  %v1245_v23 = vpop.f32.mrb[14].mxu1 }
 0x351   :  { %v1394_v24 = vadd.f32 %v4389_v5, %v1175_v22  ;;  %v4893_v25 = vpop.f32.mrb[11].mxu0  ;;  %v4904_v26 = vpop.f32.mrb[15].mxu1  ;;  %v1403_v33 = vadd.f32 %v4391_v28, %v1245_v23 }
 0x352   :  { %v6238_v25 = vpop.permute.xlu1 %1587 }
 0x353   :  { %v4390_v27 = vmul.f32 -1.442695, %v1394_v24  ;;  %v4392_v40 = vmul.f32 -1.442695, %v1403_v33  ;;  %vm1589_vm14 = vcmp.eq.s32.totalorder %v6238_v25, 1 }
 0x355   :  { %5730 = vpow2.f32 %v4390_v27 }
 0x358   :  { %v1318_v30 = vpop.f32.mrb[12].mxu0  ;;  %v1388_v31 = vpop.f32.mrb[16].mxu1 }
 0x359   :  { %v1487_v34 = vadd.f32 %v4395_v29, %v1318_v30  ;;  %v4915_v36 = vpop.f32.mrb[13].mxu0  ;;  %v4926_v37 = vpop.f32.mrb[17].mxu1  ;;  %v1496_v47 = vadd.f32 %v4397_v41, %v1388_v31 }
 0x35a   :  { %v6259_v31 = vpop.permute.xlu0 %1594 }
 0x35b   :  { %v4396_v38 = vmul.f32 -1.442695, %v1487_v34  ;;  %v4398_v53 = vmul.f32 -1.442695, %v1496_v47  ;;  %vm1596_vm15 = vcmp.eq.s32.totalorder %v6259_v31, 1 }
 0x35d   :  { %5732 = vpow2.f32 %v4396_v38 }
 0x35e   :  { %5734 = vpow2.f32 %v4392_v40 }
 0x35f   :  { %v5731_v43 = vpop.eup %5730 }
 0x360   :  { %v1398_v44 = vadd.f32 1.0, %v5731_v43  ;;  %v1478_v45 = vpop.f32.mrb[14].mxu0  ;;  %v1571_v46 = vpop.f32.mrb[18].mxu1 }
 0x361   :  { %v4937_v48 = vpop.f32.mrb[15].mxu0  ;;  %v4948_v51 = vpop.f32.mrb[19].mxu1  ;;  %v1479_v60 = vadd.f32 %v6051_v21, %v1478_v45  ;;  %v1572_v10 = vadd.f32 %v6063_v35, %v1571_v46  ;;  %v4411_v45 = vld [vmem:[%s6741_s0 + $0xe0] sm:$0xff] }
 0x362   :  { %5736 = vrcp.f32 %v1398_v44  ;;  %v4407_v44 = vld [vmem:[%s6741_s0 + $0x58] sm:$0xff] }
 0x363   :  { %5738 = vpow2.f32 %v4398_v53 }
 0x367   :  { %v5733_v54 = vpop.eup %5732 }
 0x368   :  { %v1491_v57 = vadd.f32 1.0, %v5733_v54  ;;  %v5735_v58 = vpop.eup %5734 }
 0x369   :  { %v1407_v2 = vadd.f32 1.0, %v5735_v58 }
 0x36a   :  { %5740 = vrcp.f32 %v1491_v57 }
 0x36c   :  { %v5737_v62 = vpop.eup %5736 }
 0x36d   :  { %v1482_v1 = vmul.f32 %v5737_v62, %v1479_v60  ;;  %v5739_v8 = vpop.eup %5738  ;;  %v4413_v60 = vld [vmem:[%s6741_s0 + $0x120] sm:$0xff] }
 0x36e   :  { %v1500_v61 = vadd.f32 1.0, %v5739_v8 }
 0x36f   :  { %v1483_v7 = vadd.f32 %v4393_v63, %v1482_v1 }
 0x371   :  { %5742 = vtanh.f32 %v1483_v7 }
 0x372   :  { %5744 = vrcp.f32 %v1407_v2 }
 0x374   :  { %v5741_v14 = vpop.eup %5740 }
 0x375   :  { %v1575_v17 = vmul.f32 %v5741_v14, %v1572_v10 }
 0x377   :  { %v1576_v19 = vadd.f32 %v4399_v15, %v1575_v17 }
 0x379   :  { %5746 = vtanh.f32 %v1576_v19 }
 0x37a   :  { %5748 = vrcp.f32 %v1500_v61 }
 0x37b   :  { %v5743_v5 = vpop.eup %5742 }
 0x37c   :  { %v1578_v22 = vsub.f32 %v6158_v12, %v5743_v5  ;;  %v5745_v23 = vpop.eup %5744 }
 0x37e   :  { %v1579_v24 = vmul.f32 %v5745_v23, %v1578_v22  ;;  %v4409_v22 = vld [vmem:[%s6741_s0 + $0x98] sm:$0xff] }
 0x380   :  { %v1580_v26 = vadd.f32 %v5743_v5, %v1579_v24 }
 0x382   :  { %v6244_v27 = vsel %vm1589_vm14, %v1580_v26, %v6158_v12 }
 0x383   :  { %v5747_v28 = vpop.eup %5746  ;;  %4958 = vmatmul.mubr.msk.f32.vlgmr.msra.gmra.mrb[16].mxu0 %vm57_vm10, %v6244_v27  ;;  %4969 = vmatmul.mubr.msk.f32.vlgmr.msra.gmra.mrb[20].mxu1 %vm57_vm10, %v6244_v27 }
 0x384   :  { %5449 = vmatpush3.bf16.msra.mxu0 %v5958_v11  ;;  %5455 = vmatpush3.bf16.msra.mxu1 %v5998_v49  ;;  %v1581_v29 = vsub.f32 %v6183_v20, %v5747_v28  ;;  %v5749_v30 = vpop.eup %5748 }
 0x385   :  { %5450 = vmatprep.subr.bf16.mxu0 %v5856_v3  ;;  %5456 = vmatprep.subr.bf16.mxu1 %v5856_v3 }
 0x386   :  { %4979 = vmatprep.mubr.msk.f32.mxu0 %vm5857_vm0, %v5858_v4  ;;  %4990 = vmatprep.mubr.msk.f32.mxu1 %vm5857_vm0, %v5858_v4  ;;  %v1582_v12 = vmul.f32 %v5749_v30, %v1581_v29 }
 0x388   :  { %5452 = vmatpush3.bf16.msra.mxu0 %v5969_v16  ;;  %5458 = vmatpush3.bf16.msra.mxu1 %v6004_v52  ;;  %v1583_v33 = vadd.f32 %v5747_v28, %v1582_v12  ;;  %v4415_v12 = vld [vmem:[%s6741_s0 + $0x160] sm:$0xff] }
 0x389   :  { %5459 = vmatprep.subr.bf16.mxu0 %v5856_v3  ;;  %5465 = vmatprep.subr.bf16.mxu1 %v5856_v3 }
 0x38a   :  { %v6269_v34 = vsel %vm1596_vm15, %v1583_v33, %v6183_v20  ;;  %v4405_v20 = vld [vmem:[%s6741_s0 + $0x18] sm:$0xff] }
 0x38b   :  { %4980 = vmatmul.mubr.msk.f32.vlgmr.msra.gmra.mrb[18].mxu0 %vm57_vm10, %v6269_v34  ;;  %4991 = vmatmul.mubr.msk.f32.vlgmr.msra.gmra.mrb[22].mxu1 %vm57_vm10, %v6269_v34 }
 0x38c   :  { %5461 = vmatpush3.bf16.msra.mxu0 %v5993_v42  ;;  %5467 = vmatpush3.bf16.msra.mxu1 %v6012_v56 }
 0x38d   :  { %5462 = vmatprep.subr.bf16.mxu0 %v5856_v3  ;;  %5468 = vmatprep.subr.bf16.mxu1 %v5856_v3 }
 0x38e   :  { %5001 = vmatprep.mubr.msk.f32.mxu0 %vm5857_vm0, %v5858_v4  ;;  %5012 = vmatprep.mubr.msk.f32.mxu1 %vm5857_vm0, %v5858_v4 }
 0x390   :  { %5464 = vmatpush3.bf16.msra.mxu0 %v6002_v50  ;;  %5470 = vmatpush3.bf16.msra.mxu1 %v6022_v59 }
 0x391   :  { %5477 = vmatprep.subr.bf16.mxu1 %v5856_v3  ;;  %5471 = vmatprep.subr.bf16.mxu0 %v5856_v3 }
 0x393   :  { %5002 = vmatmul.mubr.msk.f32.vlgmr.msra.gmra.mrb[20].mxu0 %vm57_vm10, %v6244_v27  ;;  %5013 = vmatmul.mubr.msk.f32.vlgmr.msra.gmra.mrb[24].mxu1 %vm57_vm10, %v6269_v34 }
 0x394   :  { %5479 = vmatpush3.bf16.msra.mxu1 %v5987_v32  ;;  %5473 = vmatpush3.bf16.msra.mxu0 %v5944_v6 }
 0x395   :  { %5480 = vmatprep.subr.bf16.mxu1 %v5856_v3  ;;  %5474 = vmatprep.subr.bf16.mxu0 %v5856_v3 }
 0x396   :  { %5023 = vmatprep.mubr.msk.f32.mxu0 %vm5857_vm0, %v5858_v4  ;;  %5034 = vmatprep.mubr.msk.f32.mxu1 %vm5857_vm0, %v5858_v4 }
 0x398   :  { %5482 = vmatpush3.bf16.msra.mxu1 %v5991_v39  ;;  %5476 = vmatpush3.bf16.msra.mxu0 %v5960_v13 }
 0x399   :  { %5483 = vmatprep.subr.bf16.mxu0 %v5856_v3  ;;  %5489 = vmatprep.subr.bf16.mxu1 %v5856_v3 }
 0x456   :  { %v1667_v36 = vpop.f32.mrb[16].mxu0  ;;  %v1737_v37 = vpop.f32.mrb[20].mxu1 }
 0x457   :  { %v1886_v38 = vadd.f32 %v4405_v20, %v1667_v36  ;;  %v4959_v40 = vpop.f32.mrb[17].mxu0  ;;  %v4970_v41 = vpop.f32.mrb[21].mxu1  ;;  %v1895_v48 = vadd.f32 %v4407_v44, %v1737_v37 }
 0x458   :  { %v6324_v41 = vpop.permute.xlu1 %2079 }
 0x459   :  { %v4406_v43 = vmul.f32 -1.442695, %v1886_v38  ;;  %v4408_v58 = vmul.f32 -1.442695, %v1895_v48  ;;  %vm2081_vm1 = vcmp.eq.s32.totalorder %v6324_v41, 1  ;;  %v4437_v41 = vld [vmem:[%s6741_s0 + $0x28] sm:$0xff] }
 0x45b   :  { %5750 = vpow2.f32 %v4406_v43 }
 0x45e   :  { %v1810_v46 = vpop.f32.mrb[18].mxu0  ;;  %v1880_v47 = vpop.f32.mrb[22].mxu1 }
 0x45f   :  { %v1979_v51 = vadd.f32 %v4411_v45, %v1810_v46  ;;  %v4981_v53 = vpop.f32.mrb[19].mxu0  ;;  %v4992_v54 = vpop.f32.mrb[23].mxu1  ;;  %v1988_v7 = vadd.f32 %v4413_v60, %v1880_v47 }
 0x461   :  { %v4412_v57 = vmul.f32 -1.442695, %v1979_v51  ;;  %v4414_v14 = vmul.f32 -1.442695, %v1988_v7  ;;  %v4427_v7 = vld [vmem:[%s6741_s0 + $0xd8] sm:$0xff] }
 0x463   :  { %5752 = vpow2.f32 %v4412_v57 }
 0x464   :  { %5754 = vpow2.f32 %v4408_v58 }
 0x465   :  { %v5751_v62 = vpop.eup %5750 }
 0x466   :  { %v1890_v63 = vadd.f32 1.0, %v5751_v62  ;;  %v1970_v1 = vpop.f32.mrb[20].mxu0  ;;  %v2063_v2 = vpop.f32.mrb[24].mxu1 }
 0x467   :  { %v5003_v8 = vpop.f32.mrb[21].mxu0  ;;  %v5014_v10 = vpop.f32.mrb[25].mxu1  ;;  %v1971_v19 = vadd.f32 %v6051_v21, %v1970_v1  ;;  %v2064_v29 = vadd.f32 %v6063_v35, %v2063_v2  ;;  %v4423_v2 = vld [vmem:[%s6741_s0 + $0x60] sm:$0xff] }
 0x468   :  { %5756 = vrcp.f32 %v1890_v63 }
 0x469   :  { %5758 = vpow2.f32 %v4414_v14 }
 0x46d   :  { %v5753_v15 = vpop.eup %5752 }
 0x46e   :  { %v1983_v17 = vadd.f32 1.0, %v5753_v15  ;;  %v5755_v61 = vpop.eup %5754 }
 0x46f   :  { %v1899_v24 = vadd.f32 1.0, %v5755_v61 }
 0x470   :  { %5760 = vrcp.f32 %v1983_v17 }
 0x472   :  { %v5757_v5 = vpop.eup %5756 }
 0x473   :  { %v1974_v23 = vmul.f32 %v5757_v5, %v1971_v19  ;;  %v5759_v28 = vpop.eup %5758 }
 0x474   :  { %v1992_v20 = vadd.f32 1.0, %v5759_v28 }
 0x475   :  { %v1975_v26 = vadd.f32 %v4409_v22, %v1974_v23  ;;  %v4429_v22 = vld [vmem:[%s6741_s0 + $0x118] sm:$0xff] }
 0x477   :  { %5762 = vtanh.f32 %v1975_v26 }
 0x478   :  { %5764 = vrcp.f32 %v1899_v24 }
 0x47a   :  { %v5761_v30 = vpop.eup %5760 }
 0x47b   :  { %v2067_v33 = vmul.f32 %v5761_v30, %v2064_v29 }
 0x47d   :  { %v2068_v36 = vadd.f32 %v4415_v12, %v2067_v33 }
 0x47f   :  { %5766 = vtanh.f32 %v2068_v36 }
 0x480   :  { %5768 = vrcp.f32 %v1992_v20 }
 0x481   :  { %v5763_v37 = vpop.eup %5762 }
 0x482   :  { %v2070_v38 = vsub.f32 %v6244_v27, %v5763_v37  ;;  %v5765_v40 = vpop.eup %5764 }
 0x484   :  { %v2071_v43 = vmul.f32 %v5765_v40, %v2070_v38 }
 0x486   :  { %v2072_v44 = vadd.f32 %v5763_v37, %v2071_v43  ;;  %v4425_v43 = vld [vmem:[%s6741_s0 + $0xa0] sm:$0xff] }
 0x488   :  { %v6330_v45 = vsel %vm2081_vm1, %v2072_v44, %v6244_v27  ;;  %v6341_v27 = vpop.permute.xlu0 %2086 }
 0x489   :  { %v5767_v46 = vpop.eup %5766  ;;  %5024 = vmatmul.mubr.msk.f32.vlgmr.msra.gmra.mrb[22].mxu0 %vm57_vm10, %v6330_v45  ;;  %5035 = vmatmul.mubr.msk.f32.vlgmr.msra.gmra.mrb[26].mxu1 %vm57_vm10, %v6330_v45  ;;  %vm2088_vm2 = vcmp.eq.s32.totalorder %v6341_v27, 1 }
 0x48a   :  { %5485 = vmatpush3.bf16.msra.mxu0 %v5958_v11  ;;  %5491 = vmatpush3.bf16.msra.mxu1 %v5998_v49  ;;  %v2073_v47 = vsub.f32 %v6269_v34, %v5767_v46  ;;  %v5769_v48 = vpop.eup %5768 }
 0x48b   :  { %5486 = vmatprep.subr.bf16.mxu0 %v5856_v3  ;;  %5492 = vmatprep.subr.bf16.mxu1 %v5856_v3 }
 0x48c   :  { %5045 = vmatprep.mubr.msk.f32.mxu0 %vm5857_vm0, %v5858_v4  ;;  %5056 = vmatprep.mubr.msk.f32.mxu1 %vm5857_vm0, %v5858_v4  ;;  %v2074_v51 = vmul.f32 %v5769_v48, %v2073_v47 }
 0x48e   :  { %5488 = vmatpush3.bf16.msra.mxu0 %v5969_v16  ;;  %5494 = vmatpush3.bf16.msra.mxu1 %v6004_v52  ;;  %v2075_v53 = vadd.f32 %v5767_v46, %v2074_v51 }
 0x48f   :  { %5495 = vmatprep.subr.bf16.mxu0 %v5856_v3  ;;  %5501 = vmatprep.subr.bf16.mxu1 %v5856_v3 }
 0x490   :  { %v6355_v54 = vsel %vm2088_vm2, %v2075_v53, %v6269_v34  ;;  %v4421_v34 = vld [vmem:[%s6741_s0 + $0x20] sm:$0xff] }
 0x491   :  { %5046 = vmatmul.mubr.msk.f32.vlgmr.msra.gmra.mrb[24].mxu0 %vm57_vm10, %v6355_v54  ;;  %5057 = vmatmul.mubr.msk.f32.vlgmr.msra.gmra.mrb[28].mxu1 %vm57_vm10, %v6355_v54 }
 0x492   :  { %5497 = vmatpush3.bf16.msra.mxu0 %v5993_v42  ;;  %5503 = vmatpush3.bf16.msra.mxu1 %v6012_v56 }
 0x493   :  { %5498 = vmatprep.subr.bf16.mxu0 %v5856_v3  ;;  %5504 = vmatprep.subr.bf16.mxu1 %v5856_v3 }
 0x494   :  { %5067 = vmatprep.mubr.msk.f32.mxu0 %vm5857_vm0, %v5858_v4  ;;  %5078 = vmatprep.mubr.msk.f32.mxu1 %vm5857_vm0, %v5858_v4 }
 0x496   :  { %5500 = vmatpush3.bf16.msra.mxu0 %v6002_v50  ;;  %5506 = vmatpush3.bf16.msra.mxu1 %v6022_v59 }
 0x497   :  { %5513 = vmatprep.subr.bf16.mxu1 %v5856_v3  ;;  %5507 = vmatprep.subr.bf16.mxu0 %v5856_v3 }
 0x499   :  { %5068 = vmatmul.mubr.msk.f32.vlgmr.msra.gmra.mrb[26].mxu0 %vm57_vm10, %v6330_v45  ;;  %5079 = vmatmul.mubr.msk.f32.vlgmr.msra.gmra.mrb[30].mxu1 %vm57_vm10, %v6355_v54 }
 0x49a   :  { %5515 = vmatpush3.bf16.msra.mxu1 %v5987_v32  ;;  %5509 = vmatpush3.bf16.msra.mxu0 %v5944_v6 }
 0x49b   :  { %5516 = vmatprep.subr.bf16.mxu1 %v5856_v3  ;;  %5510 = vmatprep.subr.bf16.mxu0 %v5856_v3 }
 0x49c   :  { %5089 = vmatprep.mubr.msk.f32.mxu0 %vm5857_vm0, %v5858_v4  ;;  %5100 = vmatprep.mubr.msk.f32.mxu1 %vm5857_vm0, %v5858_v4 }
 0x49e   :  { %5518 = vmatpush3.bf16.msra.mxu1 %v5991_v39  ;;  %5512 = vmatpush3.bf16.msra.mxu0 %v5960_v13 }
 0x49f   :  { %5519 = vmatprep.subr.bf16.mxu0 %v5856_v3  ;;  %5525 = vmatprep.subr.bf16.mxu1 %v5856_v3 }
 0x55c   :  { %v2159_v57 = vpop.f32.mrb[22].mxu0  ;;  %v2229_v58 = vpop.f32.mrb[26].mxu1 }
 0x55d   :  { %v2378_v60 = vadd.f32 %v4421_v34, %v2159_v57  ;;  %v5025_v62 = vpop.f32.mrb[23].mxu0  ;;  %v5036_v63 = vpop.f32.mrb[27].mxu1  ;;  %v2387_v14 = vadd.f32 %v4423_v2, %v2229_v58  ;;  %v4431_v34 = vld [vmem:[%s6741_s0 + $0x158] sm:$0xff] }
 0x55f   :  { %v4422_v1 = vmul.f32 -1.442695, %v2378_v60  ;;  %v4424_v5 = vmul.f32 -1.442695, %v2387_v14 }
 0x561   :  { %5770 = vpow2.f32 %v4422_v1 }
 0x564   :  { %v2302_v8 = vpop.f32.mrb[24].mxu0  ;;  %v2372_v10 = vpop.f32.mrb[28].mxu1 }
 0x565   :  { %v2471_v15 = vadd.f32 %v4427_v7, %v2302_v8  ;;  %v5047_v17 = vpop.f32.mrb[25].mxu0  ;;  %v5058_v61 = vpop.f32.mrb[29].mxu1  ;;  %v2480_v29 = vadd.f32 %v4429_v22, %v2372_v10  ;;  %v4439_v22 = vld [vmem:[%s6741_s0 + $0x68] sm:$0xff] }
 0x567   :  { %v4428_v19 = vmul.f32 -1.442695, %v2471_v15  ;;  %v4430_v33 = vmul.f32 -1.442695, %v2480_v29 }
 0x569   :  { %5772 = vpow2.f32 %v4428_v19 }
 0x56a   :  { %5774 = vpow2.f32 %v4424_v5 }
 0x56b   :  { %v5771_v23 = vpop.eup %5770 }
 0x56c   :  { %v2382_v24 = vadd.f32 1.0, %v5771_v23  ;;  %v2462_v26 = vpop.f32.mrb[26].mxu0  ;;  %v2555_v28 = vpop.f32.mrb[30].mxu1  ;;  %v4443_v23 = vld [vmem:[%s6741_s0 + $0xd0] sm:$0xff] }
 0x56d   :  { %v5069_v30 = vpop.f32.mrb[27].mxu0  ;;  %v5080_v12 = vpop.f32.mrb[31].mxu1  ;;  %v2463_v38 = vadd.f32 %v6051_v21, %v2462_v26  ;;  %v2556_v51 = vadd.f32 %v6063_v35, %v2555_v28 }
 0x56e   :  { %5776 = vrcp.f32 %v2382_v24 }
 0x56f   :  { %5778 = vpow2.f32 %v4430_v33 }
 0x573   :  { %v5773_v20 = vpop.eup %5772 }
 0x574   :  { %v2475_v36 = vadd.f32 1.0, %v5773_v20  ;;  %v5775_v37 = vpop.eup %5774 }
 0x575   :  { %v2391_v46 = vadd.f32 1.0, %v5775_v37 }
 0x576   :  { %5780 = vrcp.f32 %v2475_v36  ;;  %v4445_v36 = vld [vmem:[%s6741_s0 + $0x110] sm:$0xff] }
 0x578   :  { %v5777_v40 = vpop.eup %5776 }
 0x579   :  { %v2466_v44 = vmul.f32 %v5777_v40, %v2463_v38  ;;  %v5779_v48 = vpop.eup %5778 }
 0x57a   :  { %v2484_v21 = vadd.f32 1.0, %v5779_v48 }
 0x57b   :  { %v2467_v47 = vadd.f32 %v4425_v43, %v2466_v44 }
 0x57d   :  { %5782 = vtanh.f32 %v2467_v47 }
 0x57e   :  { %5784 = vrcp.f32 %v2391_v46 }
 0x580   :  { %v5781_v53 = vpop.eup %5780 }
 0x581   :  { %v2559_v57 = vmul.f32 %v5781_v53, %v2556_v51 }
 0x583   :  { %v2560_v58 = vadd.f32 %v4431_v34, %v2559_v57  ;;  %v6484_v57 = vld [vmem:[%s6742_s4] ss:$0 sm:$0xff] }
 0x585   :  { %5786 = vtanh.f32 %v2560_v58 }
 0x586   :  { %5788 = vrcp.f32 %v2484_v21 }
 0x587   :  { %v5783_v60 = vpop.eup %5782 }
 0x588   :  { %v2562_v62 = vsub.f32 %v6330_v45, %v5783_v60  ;;  %v5785_v63 = vpop.eup %5784 }
 0x58a   :  { %v2563_v1 = vmul.f32 %v5785_v63, %v2562_v62 }
 0x58c   :  { %v2564_v2 = vadd.f32 %v5783_v60, %v2563_v1  ;;  %v4441_v60 = vld [vmem:[%s6741_s0 + $0xa8] sm:$0xff] }
 0x58e   :  { %v6413_v35 = vsel %vm2088_vm2, %v2564_v2, %v6330_v45 }
 0x58f   :  { %v5787_v7 = vpop.eup %5786  ;;  %5090 = vmatmul.mubr.msk.f32.vlgmr.msra.gmra.mrb[28].mxu0 %vm57_vm10, %v6413_v35  ;;  %5101 = vmatmul.mubr.msk.f32.vlgmr.msra.gmra.mrb[32].mxu1 %vm57_vm10, %v6413_v35 }
 0x590   :  { %5521 = vmatpush3.bf16.msra.mxu0 %v5958_v11  ;;  %5527 = vmatpush3.bf16.msra.mxu1 %v5998_v49  ;;  %v2565_v8 = vsub.f32 %v6355_v54, %v5787_v7  ;;  %v5789_v10 = vpop.eup %5788 }
 0x591   :  { %5522 = vmatprep.subr.bf16.mxu0 %v5856_v3  ;;  %5528 = vmatprep.subr.bf16.mxu1 %v5856_v3 }
 0x592   :  { %5111 = vmatprep.mubr.msk.f32.mxu0 %vm5857_vm0, %v5858_v4  ;;  %5122 = vmatprep.mubr.msk.f32.mxu1 %vm5857_vm0, %v5858_v4  ;;  %v2566_v45 = vmul.f32 %v5789_v10, %v2565_v8 }
 0x594   :  { %5524 = vmatpush3.bf16.msra.mxu0 %v5969_v16  ;;  %5530 = vmatpush3.bf16.msra.mxu1 %v6004_v52  ;;  %v2567_v27 = vadd.f32 %v5787_v7, %v2566_v45  ;;  %v6493_v7 = vld [vmem:[%s6743_s5] ss:$0 sm:$0xff]  ;;  %v4447_v45 = vld [vmem:[%s6741_s0 + $0x150] sm:$0xff] }
 0x595   :  { %5531 = vmatprep.subr.bf16.mxu0 %v5856_v3  ;;  %5537 = vmatprep.subr.bf16.mxu1 %v5856_v3 }
 0x596   :  { %v6435_v14 = vsel %vm2081_vm1, %v2567_v27, %v6355_v54 }
 0x597   :  { %5112 = vmatmul.mubr.msk.f32.vlgmr.msra.gmra.mrb[30].mxu0 %vm57_vm10, %v6435_v14  ;;  %5123 = vmatmul.mubr.msk.f32.vlgmr.msra.gmra.mrb[34].mxu1 %vm57_vm10, %v6435_v14 }
 0x598   :  { %5533 = vmatpush3.bf16.msra.mxu0 %v5993_v42  ;;  %5539 = vmatpush3.bf16.msra.mxu1 %v6012_v56 }
 0x599   :  { %5534 = vmatprep.subr.bf16.mxu0 %v5856_v3  ;;  %5540 = vmatprep.subr.bf16.mxu1 %v5856_v3 }
 0x59a   :  { %5133 = vmatprep.mubr.msk.f32.mxu0 %vm5857_vm0, %v5858_v4  ;;  %5144 = vmatprep.mubr.msk.f32.mxu1 %vm5857_vm0, %v5858_v4 }
 0x59c   :  { %5536 = vmatpush3.bf16.msra.mxu0 %v6002_v50  ;;  %5542 = vmatpush3.bf16.msra.mxu1 %v6022_v59 }
 0x59d   :  { %5549 = vmatprep.subr.bf16.mxu1 %v5856_v3  ;;  %5543 = vmatprep.subr.bf16.mxu0 %v5856_v3 }
 0x59f   :  { %5134 = vmatmul.mubr.msk.f32.vlgmr.msra.gmra.mrb[32].mxu0 %vm57_vm10, %v6413_v35  ;;  %5145 = vmatmul.mubr.msk.f32.vlgmr.msra.gmra.mrb[36].mxu1 %vm57_vm10, %v6435_v14 }
 0x5a0   :  { %5551 = vmatpush3.bf16.msra.mxu1 %v5987_v32  ;;  %5545 = vmatpush3.bf16.msra.mxu0 %v5944_v6 }
 0x5a1   :  { %5552 = vmatprep.subr.bf16.mxu1 %v5856_v3  ;;  %5546 = vmatprep.subr.bf16.mxu0 %v5856_v3 }
 0x5a2   :  { %5155 = vmatprep.mubr.msk.f32.mxu0 %vm5857_vm0, %v5858_v4  ;;  %5166 = vmatprep.mubr.msk.f32.mxu1 %vm5857_vm0, %v5858_v4 }
 0x5a4   :  { %5554 = vmatpush3.bf16.msra.mxu1 %v5991_v39  ;;  %5548 = vmatpush3.bf16.msra.mxu0 %v5960_v13 }
 0x5a5   :  { %5555 = vmatprep.subr.bf16.mxu0 %v5856_v3  ;;  %5561 = vmatprep.subr.bf16.mxu1 %v5856_v3 }
 0x662   :  { %v2639_v54 = vpop.f32.mrb[28].mxu0  ;;  %v2709_v15 = vpop.f32.mrb[32].mxu1 }
 0x663   :  { %v2858_v17 = vadd.f32 %v4437_v41, %v2639_v54  ;;  %v5091_v61 = vpop.f32.mrb[29].mxu0  ;;  %v5102_v19 = vpop.f32.mrb[33].mxu1  ;;  %v2867_v28 = vadd.f32 %v4439_v22, %v2709_v15 }
 0x665   :  { %v4438_v5 = vmul.f32 -1.442695, %v2858_v17  ;;  %v4440_v20 = vmul.f32 -1.442695, %v2867_v28 }
 0x667   :  { %5790 = vpow2.f32 %v4438_v5 }
 0x66a   :  { %v2782_v24 = vpop.f32.mrb[30].mxu0  ;;  %v2852_v26 = vpop.f32.mrb[34].mxu1 }
 0x66b   :  { %v2951_v29 = vadd.f32 %v4443_v23, %v2782_v24  ;;  %v5113_v30 = vpop.f32.mrb[31].mxu0  ;;  %v5124_v12 = vpop.f32.mrb[35].mxu1  ;;  %v2960_v44 = vadd.f32 %v4445_v36, %v2852_v26 }
 0x66d   :  { %v4444_v33 = vmul.f32 -1.442695, %v2951_v29  ;;  %v4446_v48 = vmul.f32 -1.442695, %v2960_v44 }
 0x66f   :  { %5792 = vpow2.f32 %v4444_v33 }
 0x670   :  { %5794 = vpow2.f32 %v4440_v20 }
 0x671   :  { %v5791_v37 = vpop.eup %5790 }
 0x672   :  { %v2862_v38 = vadd.f32 1.0, %v5791_v37  ;;  %v2942_v40 = vpop.f32.mrb[32].mxu0  ;;  %v3035_v43 = vpop.f32.mrb[36].mxu1 }
 0x673   :  { %v5135_v46 = vpop.f32.mrb[33].mxu0  ;;  %v5146_v47 = vpop.f32.mrb[37].mxu1  ;;  %v2943_v21 = vadd.f32 %v6484_v57, %v2942_v40  ;;  %v3036_v8 = vadd.f32 %v6493_v7, %v3035_v43 }
 0x674   :  { %5796 = vrcp.f32 %v2862_v38  ;;  %v4461_v46 = vld [vmem:[%s6741_s0 + $0x108] sm:$0xff] }
 0x675   :  { %5798 = vpow2.f32 %v4446_v48 }
 0x679   :  { %v5793_v51 = vpop.eup %5792 }
 0x67a   :  { %v2955_v53 = vadd.f32 1.0, %v5793_v51  ;;  %v5795_v34 = vpop.eup %5794 }
 0x67b   :  { %v2871_v63 = vadd.f32 1.0, %v5795_v34 }
 0x67c   :  { %5800 = vrcp.f32 %v2955_v53 }
 0x67e   :  { %v5797_v58 = vpop.eup %5796 }
 0x67f   :  { %v2946_v62 = vmul.f32 %v5797_v58, %v2943_v21  ;;  %v5799_v2 = vpop.eup %5798 }
 0x680   :  { %v2964_v41 = vadd.f32 1.0, %v5799_v2 }
 0x681   :  { %v2947_v1 = vadd.f32 %v4441_v60, %v2946_v62 }
 0x683   :  { %5802 = vtanh.f32 %v2947_v1 }
 0x684   :  { %5804 = vrcp.f32 %v2871_v63 }
 0x686   :  { %v5801_v10 = vpop.eup %5800 }
 0x687   :  { %v3039_v27 = vmul.f32 %v5801_v10, %v3036_v8  ;;  %v4457_v10 = vld [vmem:[%s6741_s0 + $0xb0] sm:$0xff] }
 0x689   :  { %v3040_v54 = vadd.f32 %v4447_v45, %v3039_v27 }
 0x68b   :  { %5806 = vtanh.f32 %v3040_v54 }
 0x68c   :  { %5808 = vrcp.f32 %v2964_v41 }
 0x68d   :  { %v5803_v15 = vpop.eup %5802 }
 0x68e   :  { %v3042_v17 = vsub.f32 %v6413_v35, %v5803_v15  ;;  %v5805_v61 = vpop.eup %5804 }
 0x690   :  { %v3043_v19 = vmul.f32 %v5805_v61, %v3042_v17  ;;  %v4463_v61 = vld [vmem:[%s6741_s0 + $0x148] sm:$0xff] }
 0x692   :  { %v3044_v5 = vadd.f32 %v5803_v15, %v3043_v19 }
 0x694   :  { %v6503_v22 = vsel %vm1596_vm15, %v3044_v5, %v6413_v35 }
 0x695   :  { %v5807_v23 = vpop.eup %5806  ;;  %5156 = vmatmul.mubr.msk.f32.vlgmr.msra.gmra.mrb[34].mxu0 %vm57_vm10, %v6503_v22  ;;  %5167 = vmatmul.mubr.msk.f32.vlgmr.msra.gmra.mrb[38].mxu1 %vm57_vm10, %v6503_v22 }
 0x696   :  { %5557 = vmatpush3.bf16.msra.mxu0 %v5958_v11  ;;  %5563 = vmatpush3.bf16.msra.mxu1 %v5998_v49  ;;  %v3045_v24 = vsub.f32 %v6435_v14, %v5807_v23  ;;  %v5809_v26 = vpop.eup %5808 }
 0x697   :  { %5558 = vmatprep.subr.bf16.mxu0 %v5856_v3  ;;  %5564 = vmatprep.subr.bf16.mxu1 %v5856_v3 }
 0x698   :  { %5177 = vmatprep.mubr.msk.f32.mxu0 %vm5857_vm0, %v5858_v4  ;;  %5188 = vmatprep.mubr.msk.f32.mxu1 %vm5857_vm0, %v5858_v4  ;;  %v3046_v31 = vmul.f32 %v5809_v26, %v3045_v24 }
 0x69a   :  { %5560 = vmatpush3.bf16.msra.mxu0 %v5969_v16  ;;  %5566 = vmatpush3.bf16.msra.mxu1 %v6004_v52  ;;  %v3047_v35 = vadd.f32 %v5807_v23, %v3046_v31 }
 0x69b   :  { %5567 = vmatprep.subr.bf16.mxu0 %v5856_v3  ;;  %5573 = vmatprep.subr.bf16.mxu1 %v5856_v3 }
 0x69c   :  { %v6525_v28 = vsel %vm1589_vm14, %v3047_v35, %v6435_v14 }
 0x69d   :  { %5178 = vmatmul.mubr.msk.f32.vlgmr.msra.gmra.mrb[36].mxu0 %vm57_vm10, %v6525_v28  ;;  %5189 = vmatmul.mubr.msk.f32.vlgmr.msra.gmra.mrb[40].mxu1 %vm57_vm10, %v6525_v28 }
 0x69e   :  { %5569 = vmatpush3.bf16.msra.mxu0 %v5993_v42  ;;  %5575 = vmatpush3.bf16.msra.mxu1 %v6012_v56 }
 0x69f   :  { %5570 = vmatprep.subr.bf16.mxu0 %v5856_v3  ;;  %5576 = vmatprep.subr.bf16.mxu1 %v5856_v3 }
 0x6a0   :  { %5199 = vmatprep.mubr.msk.f32.mxu0 %vm5857_vm0, %v5858_v4  ;;  %5210 = vmatprep.mubr.msk.f32.mxu1 %vm5857_vm0, %v5858_v4 }
 0x6a2   :  { %5572 = vmatpush3.bf16.msra.mxu0 %v6002_v50  ;;  %5578 = vmatpush3.bf16.msra.mxu1 %v6022_v59 }
 0x6a3   :  { %5585 = vmatprep.subr.bf16.mxu1 %v5856_v3  ;;  %5579 = vmatprep.subr.bf16.mxu0 %v5856_v3 }
 0x6a5   :  { %5200 = vmatmul.mubr.msk.f32.vlgmr.msra.gmra.mrb[38].mxu0 %vm57_vm10, %v6503_v22  ;;  %5211 = vmatmul.mubr.msk.f32.vlgmr.msra.gmra.mrb[42].mxu1 %vm57_vm10, %v6525_v28 }
 0x6a6   :  { %5587 = vmatpush3.bf16.msra.mxu1 %v5987_v32  ;;  %5581 = vmatpush3.bf16.msra.mxu0 %v5944_v6  ;;  %v4453_v6 = vld [vmem:[%s6741_s0 + $0x30] sm:$0xff] }
 0x6a7   :  { %5588 = vmatprep.subr.bf16.mxu1 %v5856_v3  ;;  %5582 = vmatprep.subr.bf16.mxu0 %v5856_v3 }
 0x6a8   :  { %5221 = vmatprep.mubr.msk.f32.mxu0 %vm5857_vm0, %v5858_v4  ;;  %5232 = vmatprep.mubr.msk.f32.mxu1 %vm5857_vm0, %v5858_v4 }
 0x6aa   :  { %5590 = vmatpush3.bf16.msra.mxu1 %v5991_v39  ;;  %5584 = vmatpush3.bf16.msra.mxu0 %v5960_v13  ;;  %v4455_v39 = vld [vmem:[%s6741_s0 + $0x70] sm:$0xff]  ;;  %v4459_v13 = vld [vmem:[%s6741_s0 + $0xc8] sm:$0xff] }
 0x6ab   :  { %5591 = vmatprep.subr.bf16.mxu0 %v5856_v3  ;;  %5597 = vmatprep.subr.bf16.mxu1 %v5856_v3 }
 0x768   :  { %v3119_v32 = vpop.f32.mrb[34].mxu0  ;;  %v3189_v25 = vpop.f32.mrb[38].mxu1 }
 0x769   :  { %v3338_v14 = vadd.f32 %v4453_v6, %v3119_v32  ;;  %v5157_v29 = vpop.f32.mrb[35].mxu0  ;;  %v5168_v30 = vpop.f32.mrb[39].mxu1  ;;  %v3347_v36 = vadd.f32 %v4455_v39, %v3189_v25 }
 0x76a   :  { %v4016_v30 = vld [vmem:[%s6745_s7 + $0x10] sm:$0xff] }
 0x76b   :  { %v4454_v12 = vmul.f32 -1.442695, %v3338_v14  ;;  %v4456_v44 = vmul.f32 -1.442695, %v3347_v36 }
 0x76d   :  { %5810 = vpow2.f32 %v4454_v12  ;;  %v4017_v12 = vld [vmem:[%s6745_s7 + $0x18] sm:$0xff] }
 0x76e   :  { %v5619_v39 = vpack.c.bf16 %v4017_v12, %v4016_v30  ;;  %v4177_v30 = vld [vmem:[%s6746_s9 + $0x20] sm:$0xff]  ;;  %v4178_v12 = vld [vmem:[%s6746_s9 + $0x28] sm:$0xff] }
 0x770   :  { %v3262_v33 = vpop.f32.mrb[36].mxu0  ;;  %v3332_v20 = vpop.f32.mrb[40].mxu1 }
 0x771   :  { %v3431_v37 = vadd.f32 %v4459_v13, %v3262_v33  ;;  %v5179_v38 = vpop.f32.mrb[37].mxu0  ;;  %v5190_v40 = vpop.f32.mrb[41].mxu1  ;;  %v3440_v34 = vadd.f32 %v4461_v46, %v3332_v20  ;;  %v4469_v13 = vld [vmem:[%s6741_s0 + $0x38] sm:$0xff] }
 0x773   :  { %v4460_v43 = vmul.f32 -1.442695, %v3431_v37  ;;  %v4462_v60 = vmul.f32 -1.442695, %v3440_v34 }
 0x775   :  { %5812 = vpow2.f32 %v4460_v43  ;;  %v4471_v43 = vld [vmem:[%s6741_s0 + $0x78] sm:$0xff] }
 0x776   :  { %5814 = vpow2.f32 %v4456_v44  ;;  %v4475_v44 = vld [vmem:[%s6741_s0 + $0xc0] sm:$0xff] }
 0x777   :  { %v5811_v47 = vpop.eup %5810 }
 0x778   :  { %v3342_v48 = vadd.f32 1.0, %v5811_v47  ;;  %v3422_v51 = vpop.f32.mrb[38].mxu0  ;;  %v3515_v53 = vpop.f32.mrb[42].mxu1 }
 0x779   :  { %v5201_v21 = vpop.f32.mrb[39].mxu0  ;;  %v5212_v58 = vpop.f32.mrb[43].mxu1  ;;  %v3423_v2 = vadd.f32 %v6484_v57, %v3422_v51  ;;  %v3516_v15 = vadd.f32 %v6493_v7, %v3515_v53 }
 0x77a   :  { %5816 = vrcp.f32 %v3342_v48 }
 0x77b   :  { %5818 = vpow2.f32 %v4462_v60  ;;  %v4477_v60 = vld [vmem:[%s6741_s0 + $0x100] sm:$0xff] }
 0x77f   :  { %v5813_v62 = vpop.eup %5812 }
 0x780   :  { %v3435_v63 = vadd.f32 1.0, %v5813_v62  ;;  %v5815_v1 = vpop.eup %5814 }
 0x781   :  { %v3351_v27 = vadd.f32 1.0, %v5815_v1 }
 0x782   :  { %5820 = vrcp.f32 %v3435_v63 }
 0x784   :  { %v5817_v8 = vpop.eup %5816 }
 0x785   :  { %v3426_v45 = vmul.f32 %v5817_v8, %v3423_v2  ;;  %v5819_v54 = vpop.eup %5818 }
 0x786   :  { %v3444_v5 = vadd.f32 1.0, %v5819_v54 }
 0x787   :  { %v3427_v41 = vadd.f32 %v4457_v10, %v3426_v45 }
 0x789   :  { %5822 = vtanh.f32 %v3427_v41 }
 0x78a   :  { %5824 = vrcp.f32 %v3351_v27 }
 0x78c   :  { %v5821_v17 = vpop.eup %5820 }
 0x78d   :  { %v3519_v19 = vmul.f32 %v5821_v17, %v3516_v15 }
 0x78f   :  { %v3520_v23 = vadd.f32 %v4463_v61, %v3519_v19  ;;  %v4473_v19 = vld [vmem:[%s6741_s0 + $0xb8] sm:$0xff] }
 0x791   :  { %5826 = vtanh.f32 %v3520_v23 }
 0x792   :  { %5828 = vrcp.f32 %v3444_v5 }
 0x793   :  { %v5823_v24 = vpop.eup %5822 }
 0x794   :  { %v3522_v26 = vsub.f32 %v6503_v22, %v5823_v24  ;;  %v5825_v31 = vpop.eup %5824 }
 0x796   :  { %v3523_v35 = vmul.f32 %v5825_v31, %v3522_v26 }
 0x798   :  { %v3524_v6 = vadd.f32 %v5823_v24, %v3523_v35 }
 0x79a   :  { %v6583_v32 = vsel %vm1104_vm13, %v3524_v6, %v6503_v22  ;;  %v4015_v22 = vld [vmem:[%s6745_s7 + $0x8] sm:$0xff]  ;;  %v4479_v6 = vld [vmem:[%s6741_s0 + $0x140] sm:$0xff] }
 0x79b   :  { %v5827_v25 = vpop.eup %5826  ;;  %5222 = vmatmul.mubr.msk.f32.vlgmr.msra.gmra.mrb[40].mxu0 %vm57_vm10, %v6583_v32  ;;  %5233 = vmatmul.mubr.msk.f32.vlgmr.msra.gmra.mrb[44].mxu1 %vm57_vm10, %v6583_v32 }
 0x79c   :  { %5593 = vmatpush3.bf16.msra.mxu0 %v5958_v11  ;;  %5599 = vmatpush3.bf16.msra.mxu1 %v5998_v49  ;;  %v3525_v14 = vsub.f32 %v6525_v28, %v5827_v25  ;;  %v5829_v29 = vpop.eup %5828 }
 0x79d   :  { %5594 = vmatprep.subr.bf16.mxu0 %v5856_v3  ;;  %5600 = vmatprep.subr.bf16.mxu1 %v5856_v3 }
 0x79e   :  { %5243 = vmatprep.mubr.msk.f32.mxu0 %vm5857_vm0, %v5858_v4  ;;  %5254 = vmatprep.mubr.msk.f32.mxu1 %vm5857_vm0, %v5858_v4  ;;  %v3526_v18 = vmul.f32 %v5829_v29, %v3525_v14 }
 0x7a0   :  { %5596 = vmatpush3.bf16.msra.mxu0 %v5969_v16  ;;  %5602 = vmatpush3.bf16.msra.mxu1 %v6004_v52  ;;  %v3527_v11 = vadd.f32 %v5827_v25, %v3526_v18  ;;  %v4010_v16 = vld [vmem:[%s6744_s6] sm:$0xff] }
 0x7a1   :  { %5603 = vmatprep.subr.bf16.mxu0 %v5856_v3  ;;  %5609 = vmatprep.subr.bf16.mxu1 %v5856_v3 }
 0x7a2   :  { %v6605_v49 = vsel %vm1097_vm12, %v3527_v11, %v6525_v28  ;;  %v5616_v28 = vpack.c.bf16 %v4015_v22, %v4014_v9 }
 0x7a3   :  { %5244 = vmatmul.mubr.msk.f32.vlgmr.msra.gmra.mrb[42].mxu0 %vm57_vm10, %v6605_v49  ;;  %5255 = vmatmul.mubr.msk.f32.vlgmr.msra.gmra.mrb[46].mxu1 %vm57_vm10, %v6605_v49 }
 0x7a4   :  { %5605 = vmatpush3.bf16.msra.mxu0 %v5993_v42  ;;  %5611 = vmatpush3.bf16.msra.mxu1 %v6012_v56  ;;  %v4011_v42 = vld [vmem:[%s6744_s6 + $0x8] sm:$0xff]  ;;  %v4013_v56 = vld [vmem:[%s6744_s6 + $0x18] sm:$0xff] }
 0x7a5   :  { %5606 = vmatprep.subr.bf16.mxu0 %v5856_v3  ;;  %5612 = vmatprep.subr.bf16.mxu1 %v5856_v3  ;;  %v5622_v52 = vpack.c.bf16 %v4011_v42, %v4010_v16 }
 0x7a6   :  { %5265 = vmatprep.mubr.msk.f32.mxu0 %vm5857_vm0, %v5858_v4  ;;  %5276 = vmatprep.mubr.msk.f32.mxu1 %vm5857_vm0, %v5858_v4 }
 0x7a8   :  { %5608 = vmatpush3.bf16.msra.mxu0 %v6002_v50  ;;  %5614 = vmatpush3.bf16.msra.mxu1 %v6022_v59  ;;  %v4012_v50 = vld [vmem:[%s6744_s6 + $0x10] sm:$0xff] }
 0x7a9   :  { %5621 = vmatprep.subr.bf16.mxu1 %v5856_v3  ;;  %5615 = vmatprep.subr.bf16.mxu0 %v5856_v3  ;;  %v5625_v59 = vpack.c.bf16 %v4013_v56, %v4012_v50 }
 0x7ab   :  { %5266 = vmatmul.mubr.msk.f32.vlgmr.msra.gmra.mrb[44].mxu0 %vm57_vm10, %v6583_v32  ;;  %5277 = vmatmul.mubr.msk.f32.vlgmr.msra.gmra.mrb[48].mxu1 %vm57_vm10, %v6605_v49 }
 0x7ac   :  { %5298 = vmatprep.mubr.msk.f32.mxu1 %vm5857_vm0, %v5858_v4  ;;  %5287 = vmatprep.mubr.msk.f32.mxu0 %vm5857_vm0, %v5858_v4 }
 0x7ad   :  { %5623 = vmatpush3.bf16.msra.mxu1 %v5622_v52  ;;  %5617 = vmatpush3.bf16.msra.mxu0 %v5616_v28 }
 0x7ae   :  { %5624 = vmatprep.subr.bf16.mxu1 %v5856_v3  ;;  %5618 = vmatprep.subr.bf16.mxu0 %v5856_v3 }
 0x7b1   :  { %5626 = vmatpush3.bf16.msra.mxu1 %v5625_v59  ;;  %5620 = vmatpush3.bf16.msra.mxu0 %v5619_v39  ;;  %v5634_v39 = vpack.c.bf16 %v4178_v12, %v4177_v30 }
 0x7b2   :  { %5639 = vmatprep.subr.bf16.mxu1 %v5856_v3  ;;  %5627 = vmatprep.subr.bf16.mxu0 %v5856_v3 }
 0x86e   :  { %v3599_v33 = vpop.f32.mrb[40].mxu0  ;;  %v3669_v20 = vpop.f32.mrb[44].mxu1 }
 0x86f   :  { %v3818_v36 = vadd.f32 %v4469_v13, %v3599_v33  ;;  %v5223_v37 = vpop.f32.mrb[41].mxu0  ;;  %v5234_v38 = vpop.f32.mrb[45].mxu1  ;;  %v3827_v48 = vadd.f32 %v4471_v43, %v3669_v20  ;;  %v4179_v13 = vld [vmem:[%s6746_s9 + $0x30] sm:$0xff]  ;;  %v4180_v33 = vld [vmem:[%s6746_s9 + $0x38] sm:$0xff] }
 0x870   :  { %v5637_v20 = vpack.c.bf16 %v4180_v33, %v4179_v13 }
 0x871   :  { %v4470_v40 = vmul.f32 -1.442695, %v3818_v36  ;;  %v4472_v58 = vmul.f32 -1.442695, %v3827_v48  ;;  %v4264_v48 = vld [vmem:[%s6748_s11 + $0x8] sm:$0xff] }
 0x873   :  { %5830 = vpow2.f32 %v4470_v40  ;;  %v4483_v40 = vld [vmem:[%s6747_s8] ss:$0 sm:$0xff] }
 0x876   :  { %v3742_v46 = vpop.f32.mrb[42].mxu0  ;;  %v3812_v47 = vpop.f32.mrb[46].mxu1 }
 0x877   :  { %v3911_v51 = vadd.f32 %v4475_v44, %v3742_v46  ;;  %v5245_v53 = vpop.f32.mrb[43].mxu0  ;;  %v5256_v34 = vpop.f32.mrb[47].mxu1  ;;  %v3920_v8 = vadd.f32 %v4477_v60, %v3812_v47  ;;  %v4263_v47 = vld [vmem:[%s6748_s11] sm:$0xff] }
 0x878   :  { %v18_v53 = vstv %s6749_s12  ;;  %v4484_v34 = vld [vmem:[%s6750_s10] ss:$0 sm:$0xff] }
 0x879   :  { %v4476_v21 = vmul.f32 -1.442695, %v3911_v51  ;;  %v4478_v27 = vmul.f32 -1.442695, %v3920_v8  ;;  %v5640_v51 = vpack.c.bf16 %v4264_v48, %v4263_v47  ;;  %19 = vst [vmem:[#allocation2] sm:$0x1] %v18_v53 }
 0x87b   :  { %5832 = vpow2.f32 %v4476_v21 }
 0x87c   :  { %5834 = vpow2.f32 %v4472_v58 }
 0x87d   :  { %v5831_v62 = vpop.eup %5830 }
 0x87e   :  { %v3822_v63 = vadd.f32 1.0, %v5831_v62  ;;  %v3902_v1 = vpop.f32.mrb[44].mxu0  ;;  %v3995_v2 = vpop.f32.mrb[48].mxu1 }
 0x87f   :  { %v5267_v10 = vpop.f32.mrb[45].mxu0  ;;  %v5278_v45 = vpop.f32.mrb[49].mxu1  ;;  %v3903_v17 = vadd.f32 %v6484_v57, %v3902_v1  ;;  %v3996_v31 = vadd.f32 %v6493_v7, %v3995_v2 }
 0x880   :  { %5836 = vrcp.f32 %v3822_v63  ;;  %v4486_v63 = vld [vmem:[#allocation2] ss:$0 sm:$0xff] }
 0x881   :  { %5838 = vpow2.f32 %v4478_v27 }
 0x885   :  { %v5833_v41 = vpop.eup %5832 }
 0x886   :  { %v3915_v54 = vadd.f32 1.0, %v5833_v41  ;;  %v5835_v15 = vpop.eup %5834 }
 0x887   :  { %v3831_v23 = vadd.f32 1.0, %v5835_v15 }
 0x888   :  { %5840 = vrcp.f32 %v3915_v54 }
 0x88a   :  { %v5837_v61 = vpop.eup %5836 }
 0x88b   :  { %v3906_v5 = vmul.f32 %v5837_v61, %v3903_v17  ;;  %v5839_v26 = vpop.eup %5838 }
 0x88c   :  { %v3924_v57 = vadd.f32 1.0, %v5839_v26 }
 0x88d   :  { %v3907_v24 = vadd.f32 %v4473_v19, %v3906_v5 }
 0x88f   :  { %5842 = vtanh.f32 %v3907_v24 }
 0x890   :  { %5844 = vrcp.f32 %v3831_v23 }
 0x892   :  { %v5841_v35 = vpop.eup %5840 }
 0x893   :  { %v3999_v25 = vmul.f32 %v5841_v35, %v3996_v31 }
 0x895   :  { %v4000_v14 = vadd.f32 %v4479_v6, %v3999_v25 }
 0x897   :  { %5846 = vtanh.f32 %v4000_v14 }
 0x898   :  { %5848 = vrcp.f32 %v3924_v57 }
 0x899   :  { %v5843_v29 = vpop.eup %5842 }
 0x89a   :  { %v4002_v18 = vsub.f32 %v6583_v32, %v5843_v29  ;;  %v5845_v11 = vpop.eup %5844 }
 0x89c   :  { %v4003_v16 = vmul.f32 %v5845_v11, %v4002_v18 }
 0x89e   :  { %v4004_v42 = vadd.f32 %v5843_v29, %v4003_v16 }
 0x8a0   :  { %v4008_v7 = vsel %vm612_vm11, %v4004_v42, %v6583_v32  ;;  %v4174_v32 = vld [vmem:[%s6746_s9 + $0x8] sm:$0xff] }
 0x8a1   :  { %v5847_v50 = vpop.eup %5846  ;;  %5299 = vmatmul.mubr.msk.f32.vlgmr.msra.gmra.mrb[50].mxu1 %vm57_vm10, %v4008_v7  ;;  %v5628_v28 = vpack.c.bf16 %v4174_v32, %v4173_v0 }
 0x8a2   :  { %v4005_v52 = vsub.f32 %v6605_v49, %v5847_v50  ;;  %5324 = vmatprep.mubr.msk.f32.mxu1 %vm5857_vm0, %v5858_v4  ;;  %v5849_v56 = vpop.eup %5848  ;;  %5641 = vmatpush3.bf16.msra.mxu1 %v5640_v51 }
 0x8a4   :  { %v4006_v59 = vmul.f32 %v5849_v56, %v4005_v52 }
 0x8a6   :  { %v4007_v9 = vadd.f32 %v5847_v50, %v4006_v59 }
 0x8a8   :  { %v4009_v22 = vsel %vm605_vm9, %v4007_v9, %v6605_v49  ;;  %v4176_v49 = vld [vmem:[%s6746_s9 + $0x18] sm:$0xff] }
 0x8a9   :  { %5288 = vmatmul.mubr.msk.f32.vlgmr.msra.gmra.mrb[46].mxu0 %vm57_vm10, %v4009_v22 }
 0x8aa   :  { %5317 = vmatprep.mubr.msk.f32.mxu0 %vm5857_vm0, %v5858_v4  ;;  %5629 = vmatpush3.bf16.msra.mxu0 %v5628_v28  ;;  %v5631_v4 = vpack.c.bf16 %v4176_v49, %v4175_v55  ;;  %vm4188_vm0 = vcmask 523264  }
 0x8ab   :  { %5630 = vmatprep.subr.bf16.mxu0 %v5856_v3 }
 0x8ae   :  { %5632 = vmatpush3.bf16.msra.mxu0 %v5631_v4 }
 0x8af   :  { %5633 = vmatprep.subr.bf16.mxu0 %v5856_v3 }
 0x8b2   :  { %5635 = vmatpush3.bf16.msra.mxu0 %v5634_v39 }
 0x8b3   :  { %5636 = vmatprep.subr.bf16.mxu0 %v5856_v3 }
 0x8b6   :  { %5638 = vmatpush3.bf16.msra.mxu0 %v5637_v20 }
 0x974   :  { %v4160_v36 = vpop.f32.mrb[50].mxu1 }
 0x975   :  { %v5300_v37 = vpop.f32.mrb[51].mxu1 }
 0x97c   :  { %v4087_v38 = vpop.f32.mrb[46].mxu0 }
 0x97d   :  { %v4161_v43 = vadd.f32 %v4160_v36, %v4087_v38  ;;  %v5289_v44 = vpop.f32.mrb[47].mxu0 }
 0x97f   :  { %v4171_v3 = vadd.f32 %v4483_v40, %v4161_v43 }
 0x981   :  { %v4172_v46 = vmax.f32 %v4171_v3, 0.0 }
 0x983   :  { %5318 = vmatmul.mubr.msk.f32.vlgmr.msra.gmra.mrb[48].mxu0 %vm4188_vm0, %v4172_v46 }
 0xa56   :  { %v4258_v21 = vpop.f32.mrb[48].mxu0 }
 0xa57   :  { %v4259_v58 = vadd.f32 %v4484_v34, %v4258_v21  ;;  %v5319_v60 = vpop.f32.mrb[49].mxu0 }
 0xa59   :  { %v4262_v62 = vmax.f32 %v4259_v58, 0.0 }
 0xa5b   :  { %5325 = vmatmul.mubr.msk.f32.vlgmr.msra.gmra.mrb[52].mxu1 %vm4272_vm3, %v4262_v62 }
 0xb2e   :  { %v4342_v1 = vpop.f32.mrb[52].mxu1 }
 0xb2f   :  { %v4343_v2 = vadd.f32 %v4486_v63, %v4342_v1  ;;  %v5326_v8 = vpop.f32.mrb[53].mxu1 }
 0xb31   :  { %v4488_v10 = vmul.f32 -1.442695, %v4343_v2 }
 0xb33   :  { %5850 = vpow2.f32 %v4488_v10 }
 0xb3d   :  { %v5851_v45 = vpop.eup %5850 }
 0xb3e   :  { %v4349_v27 = vadd.f32 1.0, %v5851_v45 }
 0xb40   :  { %5852 = vrcp.f32 %v4349_v27 }
 0xb4a   :  { %v5853_v41 = vpop.eup %5852 }
 0xb4b   :  { %4353 = vst.msk [vmem:[%s6751_s13] sm:$0xff] %vm4352_vm4, %v5853_v41 }

</bundles_post_ra>
